<compile_context>
chip_gen: v5e
topology: v5e:2x2
jax: 0.10.0
libtpu: 0.0.40
codegen_flags: <defaults>
</compile_context>

<pallas_src>
import functools

import jax
import jax.numpy as jnp
from jax.experimental import pallas as pl
from jax.experimental.pallas import tpu as pltpu

# Layer chain of the PyTorch AE: encoder 64->32->16->8->3, decoder 3->8->16->32->64.
LAYER_DIMS = [(64, 32), (32, 16), (16, 8), (8, 3),
              (3, 8), (8, 16), (16, 32), (32, 64)]
N_LAYERS = len(LAYER_DIMS)
IN_DIM = LAYER_DIMS[0][0]          # 64
LATENT_DIM = LAYER_DIMS[3][1]      # 3
LATENT_LAYER = 3                   # index of Linear(8, 3) (encoder output, no activation)
OUT_PACK = 128                     # lane-dense packed output width (64 recon + 3 latent + pad)
W_PAD = 64                         # each weight padded into a (64, 64) block of the slab


def ae_kernel(x_ref, w_ref, b_ref, out_ref):
    """One batch tile of the full AE forward chain.

    x_ref  : (TB, 64)      activation tile (pipelined over the batch grid)
    w_ref  : (8, 64, 64)   packed zero-padded weight slab; layer i lives at [i, :din, :dout]
    b_ref  : (8, 64)       packed zero-padded bias slab;   layer i lives at [i, :dout]
    out_ref: (TB, 128)     packed output: cols 0:64 reconstruction, cols 64:67 latent, rest 0
    """
    h = x_ref[...].astype(jnp.float32)            # (TB, 64), stays zero-padded to 64 lanes
    enc_pad = None

    for li in range(N_LAYERS):
        w = w_ref[li]                             # (64, 64) static slice of resident slab
        b = b_ref[li:li + 1, :]                   # (1, 64), broadcast over batch rows
        # Uniform padded MXU dot: zero rows of w / zero cols of h contribute exactly 0,
        # and the zero-padded bias keeps columns >= dout at exactly 0.
        z = jnp.dot(h, w, preferred_element_type=jnp.float32) + b

        if li == LATENT_LAYER:                    # encoder output: no activation
            enc_pad = z                           # cols 0:3 = latent code, cols 3:64 = 0
            h = z
        elif li == N_LAYERS - 1:                  # decoder output: Sigmoid (full 64 wide)
            h = jax.nn.sigmoid(z)
        else:                                     # hidden layers: Tanh (tanh(0)=0 keeps padding)
            h = jnp.tanh(z)

    # Assemble the packed (TB, 128) result in registers and emit ONE unmasked,
    # full-lane-width store (no zero fill, no partial/masked slice stores).
    out_ref[...] = jnp.concatenate([h, enc_pad], axis=1).astype(out_ref.dtype)


def pack_params(weights, biases):
    """Pack the 8 (in, out) weights and 8 biases into two dense zero-padded slabs."""
    w_slab = jnp.zeros((N_LAYERS, W_PAD, W_PAD), jnp.float32)
    b_slab = jnp.zeros((N_LAYERS, W_PAD), jnp.float32)
    for i, (w, b) in enumerate(zip(weights, biases)):
        din, dout = w.shape
        w_slab = w_slab.at[i, :din, :dout].set(w.astype(jnp.float32))
        b_slab = b_slab.at[i, :dout].set(b.reshape(-1).astype(jnp.float32))
    return w_slab, b_slab


def _round_up(n, m):
    return ((n + m - 1) // m) * m


def _pick_batch_tile(B, block_batch):
    """Large tile (amortize per-step overhead), multiple of 8, and >= 2 grid steps if possible."""
    tb = min(max(block_batch // 8, 1) * 8,        # requested tile, floored to a multiple of 8
             _round_up(pl.cdiv(B, 2), 8))         # keep >= 2 grid steps (v7x has 2 TensorCores)
    if tb >= B:
        return B                                  # single full-batch tile (legal for any B)
    return tb


@functools.partial(jax.jit, static_argnames=("block_batch",))
def ae_forward(x, w_slab, b_slab, *, block_batch=2048):
    """Returns (reconstruction (B, 64), latent code (B, 3)) — same as AE.forward."""
    B = x.shape[0]
    tb = _pick_batch_tile(B, block_batch)
    grid = (pl.cdiv(B, tb),)

    # Advisory cost estimate (padded 64x64 dots; 6 tanh + 1 sigmoid layers, 64 lanes each).
    flops = 2 * B * N_LAYERS * W_PAD * W_PAD
    transcendentals = B * 7 * W_PAD
    bytes_accessed = B * (IN_DIM + OUT_PACK) * 4 + int(w_slab.size + b_slab.size) * 4

    # Explicit scoped-VMEM budget: double-buffered activation tiles + (double-counted, to be
    # safe) resident slabs + 2 MiB headroom, never below the 32 MiB v6e/v7x default.  This
    # keeps large block_batch values from tripping v5e's 16 MiB default limit.
    tile_bytes = 4 * tb * (IN_DIM + OUT_PACK)
    slab_bytes = 4 * int(w_slab.size + b_slab.size)
    vmem_limit = int(max(32 << 20, 2 * tile_bytes + 2 * slab_bytes + (2 << 20)))

    packed = pl.pallas_call(
        ae_kernel,
        # Explicit f32 output dtype (latent code is never silently truncated if x is bf16).
        out_shape=jax.ShapeDtypeStruct((B, OUT_PACK), jnp.float32),
        grid=grid,
        in_specs=[
            pl.BlockSpec((tb, IN_DIM), lambda i: (i, 0)),                  # activations: pipelined
            pl.BlockSpec((N_LAYERS, W_PAD, W_PAD), lambda i: (0, 0, 0)),   # weights: resident
            pl.BlockSpec((N_LAYERS, W_PAD), lambda i: (0, 0)),             # biases: resident
        ],
        out_specs=pl.BlockSpec((tb, OUT_PACK), lambda i: (i, 0)),
        compiler_params=pltpu.CompilerParams(
            dimension_semantics=("parallel",),       # megacore-shard the batch axis (v7x)
            vmem_limit_bytes=vmem_limit),
        cost_estimate=pl.CostEstimate(
            flops=flops, transcendentals=transcendentals, bytes_accessed=bytes_accessed),
    )(x, w_slab, b_slab)

    recon = packed[:, :IN_DIM].astype(x.dtype)
    enc = packed[:, IN_DIM:IN_DIM + LATENT_DIM].astype(x.dtype)
    return recon, enc


def init_params(key):
    """PyTorch-default-like U(-1/sqrt(fan_in), +1/sqrt(fan_in)) init.

    Weights are stored as (in_features, out_features) — already transposed relative to
    PyTorch's (out, in) convention — so the kernel computes x @ W + b.
    """
    ws, bs = [], []
    for din, dout in LAYER_DIMS:
        key, kw, kb = jax.random.split(key, 3)
        bound = 1.0 / float(din) ** 0.5
        ws.append(jax.random.uniform(kw, (din, dout), jnp.float32, -bound, bound))
        bs.append(jax.random.uniform(kb, (dout,), jnp.float32, -bound, bound))
    return ws, bs


def ae_reference(x, weights, biases):
    """Plain-JAX reference matching the PyTorch module."""
    h = x
    enc = None
    for li, (w, b) in enumerate(zip(weights, biases)):
        z = h @ w + b
        if li == LATENT_LAYER:
            enc = z
            h = z
        elif li == N_LAYERS - 1:
            h = jax.nn.sigmoid(z)
        else:
            h = jnp.tanh(z)
    return h, enc


if __name__ == "__main__":
    key = jax.random.PRNGKey(0)
    key_params, key_x = jax.random.split(key)

    weights, biases = init_params(key_params)
    w_slab, b_slab = pack_params(weights, biases)

    B = 256
    x = jax.random.uniform(key_x, (B, IN_DIM), jnp.float32)  # MNIST-row-like input in [0, 1)

    # With the default block_batch, the tile picker yields tb=128 -> a 2-step grid
    # (both v7x TensorCores busy; exercises the pipelined batch axis).
    out, enc = ae_forward(x, w_slab, b_slab)
    out = jax.block_until_ready(out)
    enc = jax.block_until_ready(enc)

    out_ref, enc_ref = ae_reference(x, weights, biases)
    assert out.shape == (B, IN_DIM) and enc.shape == (B, LATENT_DIM)
    assert jnp.allclose(out, out_ref, atol=1e-5, rtol=1e-5)
    assert jnp.allclose(enc, enc_ref, atol=1e-5, rtol=1e-5)

    print("KERNEL_OK")
</pallas_src>

<mosaic_0001>
module attributes {stable_mosaic.version = 11 : i64} {
  func.func @ae_kernel(%arg0: i32, %arg1: memref<128x64xf32, #tpu.memory_space<vmem>>, %arg2: memref<8x64x64xf32, #tpu.memory_space<vmem>>, %arg3: memref<8x64xf32, #tpu.memory_space<vmem>>, %arg4: memref<128x128xf32, #tpu.memory_space<vmem>>) attributes {dimension_semantics = [#tpu.dimension_semantics<parallel>], iteration_bounds = array<i64: 2>, scalar_prefetch = 0 : i64, scratch_operands = 0 : i64, tpu.core_type = #tpu.core_type<tc>, window_params = [{transform_indices = @transform_0, window_bounds = array<i64: 128, 64>}, {pipeline_mode = #tpu.pipeline_mode<synchronous>, transform_indices = @transform_1, window_bounds = array<i64: 8, 64, 64>}, {pipeline_mode = #tpu.pipeline_mode<synchronous>, transform_indices = @transform_2, window_bounds = array<i64: 8, 64>}, {transform_indices = @transform_3, window_bounds = array<i64: 128, 128>}]} {
    %c0 = arith.constant 0 : index
    %c0_0 = arith.constant 0 : index
    %0 = vector.load %arg1[%c0, %c0_0] : memref<128x64xf32, #tpu.memory_space<vmem>>, vector<128x64xf32>
    %c0_1 = arith.constant 0 : index
    %c0_2 = arith.constant 0 : index
    %c0_3 = arith.constant 0 : index
    %1 = vector.load %arg2[%c0_1, %c0_2, %c0_3] : memref<8x64x64xf32, #tpu.memory_space<vmem>>, vector<1x64x64xf32>
    %2 = vector.shape_cast %1 : vector<1x64x64xf32> to vector<64x64xf32>
    %c0_4 = arith.constant 0 : index
    %c0_5 = arith.constant 0 : index
    %3 = vector.load %arg3[%c0_4, %c0_5] : memref<8x64xf32, #tpu.memory_space<vmem>>, vector<1x64xf32>
    %cst = arith.constant dense<0.000000e+00> : vector<128x64xf32>
    %4 = tpu.matmul %0, %2, %cst {dimension_numbers = #tpu.dot_dimension_numbers<[1], [0], [0], [1], [0, 0, 1, 1], [], []>} : vector<128x64xf32>, vector<64x64xf32>, vector<128x64xf32> -> vector<128x64xf32>
    %5 = vector.broadcast %3 : vector<1x64xf32> to vector<128x64xf32>
    %6 = arith.addf %4, %5 : vector<128x64xf32>
    %7 = math.tanh %6 : vector<128x64xf32>
    %c1 = arith.constant 1 : index
    %c0_6 = arith.constant 0 : index
    %c0_7 = arith.constant 0 : index
    %8 = vector.load %arg2[%c1, %c0_6, %c0_7] : memref<8x64x64xf32, #tpu.memory_space<vmem>>, vector<1x64x64xf32>
    %9 = vector.shape_cast %8 : vector<1x64x64xf32> to vector<64x64xf32>
    %c1_8 = arith.constant 1 : index
    %c0_9 = arith.constant 0 : index
    %10 = vector.load %arg3[%c1_8, %c0_9] : memref<8x64xf32, #tpu.memory_space<vmem>>, vector<1x64xf32>
    %cst_10 = arith.constant dense<0.000000e+00> : vector<128x64xf32>
    %11 = tpu.matmul %7, %9, %cst_10 {dimension_numbers = #tpu.dot_dimension_numbers<[1], [0], [0], [1], [0, 0, 1, 1], [], []>} : vector<128x64xf32>, vector<64x64xf32>, vector<128x64xf32> -> vector<128x64xf32>
    %12 = vector.broadcast %10 : vector<1x64xf32> to vector<128x64xf32>
    %13 = arith.addf %11, %12 : vector<128x64xf32>
    %14 = math.tanh %13 : vector<128x64xf32>
    %c2 = arith.constant 2 : index
    %c0_11 = arith.constant 0 : index
    %c0_12 = arith.constant 0 : index
    %15 = vector.load %arg2[%c2, %c0_11, %c0_12] : memref<8x64x64xf32, #tpu.memory_space<vmem>>, vector<1x64x64xf32>
    %16 = vector.shape_cast %15 : vector<1x64x64xf32> to vector<64x64xf32>
    %c2_13 = arith.constant 2 : index
    %c0_14 = arith.constant 0 : index
    %17 = vector.load %arg3[%c2_13, %c0_14] : memref<8x64xf32, #tpu.memory_space<vmem>>, vector<1x64xf32>
    %cst_15 = arith.constant dense<0.000000e+00> : vector<128x64xf32>
    %18 = tpu.matmul %14, %16, %cst_15 {dimension_numbers = #tpu.dot_dimension_numbers<[1], [0], [0], [1], [0, 0, 1, 1], [], []>} : vector<128x64xf32>, vector<64x64xf32>, vector<128x64xf32> -> vector<128x64xf32>
    %19 = vector.broadcast %17 : vector<1x64xf32> to vector<128x64xf32>
    %20 = arith.addf %18, %19 : vector<128x64xf32>
    %21 = math.tanh %20 : vector<128x64xf32>
    %c3 = arith.constant 3 : index
    %c0_16 = arith.constant 0 : index
    %c0_17 = arith.constant 0 : index
    %22 = vector.load %arg2[%c3, %c0_16, %c0_17] : memref<8x64x64xf32, #tpu.memory_space<vmem>>, vector<1x64x64xf32>
    %23 = vector.shape_cast %22 : vector<1x64x64xf32> to vector<64x64xf32>
    %c3_18 = arith.constant 3 : index
    %c0_19 = arith.constant 0 : index
    %24 = vector.load %arg3[%c3_18, %c0_19] : memref<8x64xf32, #tpu.memory_space<vmem>>, vector<1x64xf32>
    %cst_20 = arith.constant dense<0.000000e+00> : vector<128x64xf32>
    %25 = tpu.matmul %21, %23, %cst_20 {dimension_numbers = #tpu.dot_dimension_numbers<[1], [0], [0], [1], [0, 0, 1, 1], [], []>} : vector<128x64xf32>, vector<64x64xf32>, vector<128x64xf32> -> vector<128x64xf32>
    %26 = vector.broadcast %24 : vector<1x64xf32> to vector<128x64xf32>
    %27 = arith.addf %25, %26 : vector<128x64xf32>
    %c4 = arith.constant 4 : index
    %c0_21 = arith.constant 0 : index
    %c0_22 = arith.constant 0 : index
    %28 = vector.load %arg2[%c4, %c0_21, %c0_22] : memref<8x64x64xf32, #tpu.memory_space<vmem>>, vector<1x64x64xf32>
    %29 = vector.shape_cast %28 : vector<1x64x64xf32> to vector<64x64xf32>
    %c4_23 = arith.constant 4 : index
    %c0_24 = arith.constant 0 : index
    %30 = vector.load %arg3[%c4_23, %c0_24] : memref<8x64xf32, #tpu.memory_space<vmem>>, vector<1x64xf32>
    %cst_25 = arith.constant dense<0.000000e+00> : vector<128x64xf32>
    %31 = tpu.matmul %27, %29, %cst_25 {dimension_numbers = #tpu.dot_dimension_numbers<[1], [0], [0], [1], [0, 0, 1, 1], [], []>} : vector<128x64xf32>, vector<64x64xf32>, vector<128x64xf32> -> vector<128x64xf32>
    %32 = vector.broadcast %30 : vector<1x64xf32> to vector<128x64xf32>
    %33 = arith.addf %31, %32 : vector<128x64xf32>
    %34 = math.tanh %33 : vector<128x64xf32>
    %c5 = arith.constant 5 : index
    %c0_26 = arith.constant 0 : index
    %c0_27 = arith.constant 0 : index
    %35 = vector.load %arg2[%c5, %c0_26, %c0_27] : memref<8x64x64xf32, #tpu.memory_space<vmem>>, vector<1x64x64xf32>
    %36 = vector.shape_cast %35 : vector<1x64x64xf32> to vector<64x64xf32>
    %c5_28 = arith.constant 5 : index
    %c0_29 = arith.constant 0 : index
    %37 = vector.load %arg3[%c5_28, %c0_29] : memref<8x64xf32, #tpu.memory_space<vmem>>, vector<1x64xf32>
    %cst_30 = arith.constant dense<0.000000e+00> : vector<128x64xf32>
    %38 = tpu.matmul %34, %36, %cst_30 {dimension_numbers = #tpu.dot_dimension_numbers<[1], [0], [0], [1], [0, 0, 1, 1], [], []>} : vector<128x64xf32>, vector<64x64xf32>, vector<128x64xf32> -> vector<128x64xf32>
    %39 = vector.broadcast %37 : vector<1x64xf32> to vector<128x64xf32>
    %40 = arith.addf %38, %39 : vector<128x64xf32>
    %41 = math.tanh %40 : vector<128x64xf32>
    %c6 = arith.constant 6 : index
    %c0_31 = arith.constant 0 : index
    %c0_32 = arith.constant 0 : index
    %42 = vector.load %arg2[%c6, %c0_31, %c0_32] : memref<8x64x64xf32, #tpu.memory_space<vmem>>, vector<1x64x64xf32>
    %43 = vector.shape_cast %42 : vector<1x64x64xf32> to vector<64x64xf32>
    %c6_33 = arith.constant 6 : index
    %c0_34 = arith.constant 0 : index
    %44 = vector.load %arg3[%c6_33, %c0_34] : memref<8x64xf32, #tpu.memory_space<vmem>>, vector<1x64xf32>
    %cst_35 = arith.constant dense<0.000000e+00> : vector<128x64xf32>
    %45 = tpu.matmul %41, %43, %cst_35 {dimension_numbers = #tpu.dot_dimension_numbers<[1], [0], [0], [1], [0, 0, 1, 1], [], []>} : vector<128x64xf32>, vector<64x64xf32>, vector<128x64xf32> -> vector<128x64xf32>
    %46 = vector.broadcast %44 : vector<1x64xf32> to vector<128x64xf32>
    %47 = arith.addf %45, %46 : vector<128x64xf32>
    %48 = math.tanh %47 : vector<128x64xf32>
    %c7 = arith.constant 7 : index
    %c0_36 = arith.constant 0 : index
    %c0_37 = arith.constant 0 : index
    %49 = vector.load %arg2[%c7, %c0_36, %c0_37] : memref<8x64x64xf32, #tpu.memory_space<vmem>>, vector<1x64x64xf32>
    %50 = vector.shape_cast %49 : vector<1x64x64xf32> to vector<64x64xf32>
    %c7_38 = arith.constant 7 : index
    %c0_39 = arith.constant 0 : index
    %51 = vector.load %arg3[%c7_38, %c0_39] : memref<8x64xf32, #tpu.memory_space<vmem>>, vector<1x64xf32>
    %cst_40 = arith.constant dense<0.000000e+00> : vector<128x64xf32>
    %52 = tpu.matmul %48, %50, %cst_40 {dimension_numbers = #tpu.dot_dimension_numbers<[1], [0], [0], [1], [0, 0, 1, 1], [], []>} : vector<128x64xf32>, vector<64x64xf32>, vector<128x64xf32> -> vector<128x64xf32>
    %53 = vector.broadcast %51 : vector<1x64xf32> to vector<128x64xf32>
    %54 = arith.addf %52, %53 : vector<128x64xf32>
    %55 = arith.negf %54 : vector<128x64xf32>
    %56 = math.exp %55 : vector<128x64xf32>
    %cst_41 = arith.constant 1.000000e+00 : f32
    %57 = vector.broadcast %cst_41 : f32 to vector<128x64xf32>
    %58 = arith.addf %57, %56 : vector<128x64xf32>
    %59 = arith.divf %57, %58 : vector<128x64xf32>
    %60 = tpu.concatenate %59, %27 in 1 : vector<128x64xf32>, vector<128x64xf32> -> vector<128x128xf32>
    %c0_42 = arith.constant 0 : index
    %c0_43 = arith.constant 0 : index
    %61 = vector.load %arg4[%c0_42, %c0_43] : memref<128x128xf32, #tpu.memory_space<vmem>>, vector<128x128xf32>
    tpu.vector_store %arg4[%c0_42, %c0_43], %60 {strides = array<i32>} : memref<128x128xf32, #tpu.memory_space<vmem>>, vector<128x128xf32>,
    return
  }
  func.func @transform_0(%arg0: i32) -> (i32, i32) {
    %c0_i32 = arith.constant 0 : i32
    %c0_i32_0 = arith.constant 0 : i32
    return %arg0, %c0_i32 : i32, i32
  }
  func.func @transform_1(%arg0: i32) -> (i32, i32, i32) {
    %c0_i32 = arith.constant 0 : i32
    %c0_i32_0 = arith.constant 0 : i32
    %c0_i32_1 = arith.constant 0 : i32
    %c0_i32_2 = arith.constant 0 : i32
    return %c0_i32, %c0_i32_0, %c0_i32_1 : i32, i32, i32
  }
  func.func @transform_2(%arg0: i32) -> (i32, i32) {
    %c0_i32 = arith.constant 0 : i32
    %c0_i32_0 = arith.constant 0 : i32
    %c0_i32_1 = arith.constant 0 : i32
    return %c0_i32, %c0_i32_0 : i32, i32
  }
  func.func @transform_3(%arg0: i32) -> (i32, i32) {
    %c0_i32 = arith.constant 0 : i32
    %c0_i32_0 = arith.constant 0 : i32
    return %arg0, %c0_i32 : i32, i32
  }
}

</mosaic_0001>

<bundles_post_ra>
// kernel: ae_forward.1
= control target key start
LH: loop header
LB: loop body
LE: loop exit
PB: predicated region body
PF: predicated region fallthrough
CT: control target
= control target key end

     0   :  { %8 = vsyncpa [#allocation3], 0  ;;  %s2256_s12 = smov 0   ;;  %s2647_s0 = inlined_call_operand.vmem [shape: f32[256,64], index: 0, kind: input, shape index: {}]   ;;  %s2648_s1 = inlined_call_operand.hbm [shape: f32[8,64,64], index: 1, kind: input, shape index: {}]   ;;  %s2649_s2 = inlined_call_operand.vmem [shape: f32[8,64], index: 2, kind: input, shape index: {}]   ;;  %s2650_s3 = inlined_call_operand.vmem [shape: f32[256,128], index: 3, kind: output, shape index: {}]  }
   0x1 LB: > { %s124_s15 = sshll.u32 %s2648_s1, 4  ;;  %s1747_s16 = sadd.s32 4294967295, %s2230_s12   ;;  %s2230_s12 = sphi %s2256_s12, %s14_s12   ;;  %s125_s15 = int_to_ptr.hbm [resolvable:$true] %s124_s15 }
   0x2   : > { %p1749_p0 = scmp.ge.s32.totalorder %s2230_s12, 1  ;;  %p113_p1 = scmp.lt.s32.totalorder %s2230_s12, 3 }
   0x3   : > { %p1912_p2 = scmp.eq.s32.totalorder %s1747_s16, 0  ;;  %s2232_s17 = smov [#allocation2]  }
   0x4   : > { %p114_p3 = pnand %p1749_p0, %p113_p1  ;;  %s126_s18 = sshll.u32 %s2232_s17, 4  ;;  %s127_s18 = int_to_ptr.vmem [resolvable:$true] %s126_s18 }
   0x5   : > { %s2233_s19 = smov 128   ;;  %s2234_s20 = smov 8  }
   0x6   : > { %p1908_p4 = pneg %p114_p3  ;;  %154 = sbr.rel (%p114_p3) target bundleno = 1268 (0x4f4), region = 32 }
   0x8   : > { %p1909_p5 = pnand %p1912_p2, %p1908_p4 }
   0xa   : > { %1911 = dma.hbm_to_vmem [thread:$0]  (!%p1909_p5), %s125_s15, 8192, %s127_s18, [#allocation3], %s2233_s19, %s2233_s19, %s2234_s20  }
   0xb   : > { %2225 = dma.done.wait (%p1912_p2), [#allocation3], 8192  }
   0xc   : > { %2227 = vsyncadd (%p1912_p2), [#allocation3], 4294959104  ;;  %s1754_s21 = sshll.u32 %s1747_s16, 4  ;;  %v214_v0 = vld [vmem:[#allocation2 + $0x38] sm:$0xff]  ;;  %v213_v1 = vld [vmem:[#allocation2 + $0x30] sm:$0xff]  ;;  %vm217_vm0 = vcmask 523264  }
   0xd   : > { %p180_p6 = scmp.lt.s32.totalorder %s1754_s21, 31  ;;  %274 = vmatpush.msra.mxu0 %v214_v0  ;;  %v212_v2 = vld [vmem:[#allocation2 + $0x28] sm:$0xff]  ;;  %v211_v3 = vld [vmem:[#allocation2 + $0x20] sm:$0xff]  ;;  %v210_v4 = vld [vmem:[#allocation2 + $0x18] sm:$0xff]  ;;  %s2235_s7 = smov 64  }
   0xe   : > { %v209_v5 = vld [vmem:[#allocation2 + $0x10] sm:$0xff]  ;;  %v208_v6 = vld [vmem:[#allocation2 + $0x8] sm:$0xff]  ;;  %v207_v7 = vld [vmem:[#allocation2] sm:$0xff] }
   0xf   : > { %275 = vmatpush.msra.mxu0 %v213_v1  ;;  %s2652_s21 = smov (!%p180_p6, %s1754_s21), 31  ;;  %v355_v20 = vld [vmem:[#allocation2 + $0x78] sm:$0xff]  ;;  %v354_v21 = vld [vmem:[#allocation2 + $0x70] sm:$0xff]  ;;  %v353_v22 = vld [vmem:[#allocation2 + $0x68] sm:$0xff] }
  0x10   : > { %s1755_s22 = sshll.u32 %s2652_s21, 3  ;;  %414 = vmatpush.msra.mxu1 %v355_v20  ;;  %v352_v24 = vld [vmem:[#allocation2 + $0x60] sm:$0xff]  ;;  %v351_v25 = vld [vmem:[#allocation2 + $0x58] sm:$0xff]  ;;  %v350_v26 = vld [vmem:[#allocation2 + $0x50] sm:$0xff] }
  0x11   : > { %276 = vmatpush.msra.mxu0 %v212_v2  ;;  %s2275_s25 = scalar_lea.vmem %s2647_s0, %s1755_s22  ;;  %v349_v27 = vld [vmem:[#allocation2 + $0x48] sm:$0xff]  ;;  %v348_v29 = vld [vmem:[#allocation2 + $0x40] sm:$0xff]  ;;  %s2598_s19 = scalar_lea.vmem %s2650_s3, %s1755_s22 }
  0x12   : > { %v191_v8 = vld [vmem:[%s2275_s25] sm:$0xff]  ;;  %v192_v9 = vld [vmem:[%s2275_s25 + $0x8] sm:$0xff]  ;;  %v193_v10 = vld [vmem:[%s2275_s25 + $0x10] sm:$0xff]  ;;  %415 = vmatpush.msra.mxu1 %v354_v21 }
  0x13   : > { %277 = vmatpush.msra.mxu0 %v211_v3  ;;  %v194_v11 = vld [vmem:[%s2275_s25 + $0x18] sm:$0xff]  ;;  %v195_v12 = vld [vmem:[%s2275_s25 + $0x20] sm:$0xff]  ;;  %v196_v13 = vld [vmem:[%s2275_s25 + $0x28] sm:$0xff] }
  0x14   : > { %v197_v14 = vld [vmem:[%s2275_s25 + $0x30] sm:$0xff]  ;;  %v198_v15 = vld [vmem:[%s2275_s25 + $0x38] sm:$0xff]  ;;  %v199_v16 = vld [vmem:[%s2275_s25 + $0x40] sm:$0xff]  ;;  %416 = vmatpush.msra.mxu1 %v353_v22 }
  0x15   : > { %278 = vmatpush.msra.mxu0 %v210_v4  ;;  %v200_v17 = vld [vmem:[%s2275_s25 + $0x48] sm:$0xff]  ;;  %v201_v18 = vld [vmem:[%s2275_s25 + $0x50] sm:$0xff]  ;;  %v202_v19 = vld [vmem:[%s2275_s25 + $0x58] sm:$0xff] }
  0x16   : > { %v203_v23 = vld [vmem:[%s2275_s25 + $0x60] sm:$0xff]  ;;  %417 = vmatpush.msra.mxu1 %v352_v24  ;;  %v204_v28 = vld [vmem:[%s2275_s25 + $0x68] sm:$0xff]  ;;  %v205_v30 = vld [vmem:[%s2275_s25 + $0x70] sm:$0xff] }
  0x17   : > { %279 = vmatpush.msra.mxu0 %v209_v5  ;;  %v206_v31 = vld [vmem:[%s2275_s25 + $0x78] sm:$0xff]  ;;  %v2312_v32 = vld [vmem:[%s2649_s2] ss:$0 sm:$0xff] }
  0x18   : > { %418 = vmatpush.msra.mxu1 %v351_v25  ;;  %v2349_v25 = vld [vmem:[%s2649_s2 + $0x1] ss:$0 sm:$0xff] }
  0x19   : > { %280 = vmatpush.msra.mxu0 %v208_v6 }
  0x1a   : > { %419 = vmatpush.msra.mxu1 %v350_v26 }
  0x1b   : > { %281 = vmatpush.msra.mxu0 %v207_v7  ;;  %v495_v7 = vld [vmem:[#allocation2 + $0xb8] sm:$0xff] }
  0x1c   : > { %1758 = vmatmul.msk.f32.vlgmr.msra.gmra.mxu0 %vm217_vm0, %v191_v8  ;;  %420 = vmatpush.msra.mxu1 %v349_v27  ;;  %v494_v8 = vld [vmem:[#allocation2 + $0xb0] sm:$0xff] }
  0x1d   : > { %554 = vmatpush.msra.mxu2 %v495_v7  ;;  %v631_v7 = vld [vmem:[#allocation2 + $0xd8] sm:$0xff] }
  0x1e   : > { %421 = vmatpush.msra.mxu1 %v348_v29 }
  0x1f   : > { %555 = vmatpush.msra.mxu2 %v494_v8 }
  0x24   : > { %1759 = vmatmul.msk.f32.gmra.mxu0 %vm217_vm0, %v192_v9  ;;  %v493_v9 = vld [vmem:[#allocation2 + $0xa8] sm:$0xff] }
  0x25   : > { %556 = vmatpush.msra.mxu2 %v493_v9  ;;  %v630_v9 = vld [vmem:[#allocation2 + $0xd0] sm:$0xff] }
  0x2c   : > { %1760 = vmatmul.msk.f32.gmra.mxu0 %vm217_vm0, %v193_v10  ;;  %v492_v10 = vld [vmem:[#allocation2 + $0xa0] sm:$0xff] }
  0x2d   : > { %557 = vmatpush.msra.mxu2 %v492_v10 }
  0x34   : > { %1761 = vmatmul.msk.f32.gmra.mxu0 %vm217_vm0, %v194_v11 }
  0x3c   : > { %1762 = vmatmul.msk.f32.gmra.mxu0 %vm217_vm0, %v195_v12 }
  0x44   : > { %1763 = vmatmul.msk.f32.gmra.mxu0 %vm217_vm0, %v196_v13 }
  0x4c   : > { %1764 = vmatmul.msk.f32.gmra.mxu0 %vm217_vm0, %v197_v14  ;;  %v491_v14 = vld [vmem:[#allocation2 + $0x98] sm:$0xff] }
  0x4d   : > { %558 = vmatpush.msra.mxu2 %v491_v14 }
  0x54   : > { %1765 = vmatmul.msk.f32.gmra.mxu0 %vm217_vm0, %v198_v15  ;;  %v490_v15 = vld [vmem:[#allocation2 + $0x90] sm:$0xff] }
  0x55   : > { %559 = vmatpush.msra.mxu2 %v490_v15 }
  0x5c   : > { %1766 = vmatmul.msk.f32.gmra.mxu0 %vm217_vm0, %v199_v16  ;;  %v489_v16 = vld [vmem:[#allocation2 + $0x88] sm:$0xff] }
  0x5d   : > { %560 = vmatpush.msra.mxu2 %v489_v16 }
  0x64   : > { %1767 = vmatmul.msk.f32.gmra.mxu0 %vm217_vm0, %v200_v17  ;;  %v488_v17 = vld [vmem:[#allocation2 + $0x80] sm:$0xff] }
  0x65   : > { %561 = vmatpush.msra.mxu2 %v488_v17  ;;  %v759_v17 = vld [vmem:[#allocation2 + $0x138] sm:$0xff] }
  0x66   : > { %818 = vmatpush.msrb.mxu0 %v759_v17 }
  0x6c   : > { %1768 = vmatmul.msk.f32.gmra.mxu0 %vm217_vm0, %v201_v18 }
  0x74   : > { %1769 = vmatmul.msk.f32.gmra.mxu0 %vm217_vm0, %v202_v19 }
  0x7c   : > { %1770 = vmatmul.msk.f32.gmra.mxu0 %vm217_vm0, %v203_v23 }
  0x84   : > { %1771 = vmatmul.msk.f32.gmra.mxu0 %vm217_vm0, %v204_v28 }
  0x8c   : > { %1772 = vmatmul.msk.f32.gmra.mxu0 %vm217_vm0, %v205_v30 }
  0x94   : > { %1773 = vmatmul.msk.f32.gmra.mxu0 %vm217_vm0, %v206_v31 }
  0x99   : > { %v283_v33 = vpop.f32.mrf.mxu0 }
  0x9a   : > { %v284_v34 = vadd.f32 %v2312_v32, %v283_v33 }
  0x9c   : > { %1934 = vtanh.f32 %v284_v34 }
  0xa1   : > { %v286_v35 = vpop.f32.mrf.mxu0 }
  0xa2   : > { %v1935_v36 = vpop.eup %1934  ;;  %v287_v37 = vadd.f32 %v2312_v32, %v286_v35 }
  0xa3   : > { %1774 = vmatmul.msk.f32.vlgmr.msra.gmra.mxu1 %vm217_vm0, %v1935_v36 }
  0xa4   : > { %1936 = vtanh.f32 %v287_v37 }
  0xa9   : > { %v289_v38 = vpop.f32.mrf.mxu0 }
  0xaa   : > { %v1937_v39 = vpop.eup %1936  ;;  %v290_v40 = vadd.f32 %v2312_v32, %v289_v38 }
  0xab   : > { %1775 = vmatmul.msk.f32.gmra.mxu1 %vm217_vm0, %v1937_v39 }
  0xac   : > { %1938 = vtanh.f32 %v290_v40 }
  0xb1   : > { %v292_v41 = vpop.f32.mrf.mxu0 }
  0xb2   : > { %v1939_v42 = vpop.eup %1938  ;;  %v293_v43 = vadd.f32 %v2312_v32, %v292_v41 }
  0xb3   : > { %1776 = vmatmul.msk.f32.gmra.mxu1 %vm217_vm0, %v1939_v42 }
  0xb4   : > { %1940 = vtanh.f32 %v293_v43 }
  0xb9   : > { %v295_v44 = vpop.f32.mrf.mxu0 }
  0xba   : > { %v1941_v45 = vpop.eup %1940  ;;  %v296_v46 = vadd.f32 %v2312_v32, %v295_v44 }
  0xbb   : > { %1777 = vmatmul.msk.f32.gmra.mxu1 %vm217_vm0, %v1941_v45 }
  0xbc   : > { %1942 = vtanh.f32 %v296_v46 }
  0xc1   : > { %v298_v47 = vpop.f32.mrf.mxu0 }
  0xc2   : > { %v1943_v48 = vpop.eup %1942  ;;  %v299_v49 = vadd.f32 %v2312_v32, %v298_v47 }
  0xc3   : > { %1778 = vmatmul.msk.f32.gmra.mxu1 %vm217_vm0, %v1943_v48 }
  0xc4   : > { %1944 = vtanh.f32 %v299_v49 }
  0xc9   : > { %v301_v50 = vpop.f32.mrf.mxu0 }
  0xca   : > { %v1945_v51 = vpop.eup %1944  ;;  %v302_v52 = vadd.f32 %v2312_v32, %v301_v50 }
  0xcb   : > { %1779 = vmatmul.msk.f32.gmra.mxu1 %vm217_vm0, %v1945_v51 }
  0xcc   : > { %1946 = vtanh.f32 %v302_v52 }
  0xd1   : > { %v304_v53 = vpop.f32.mrf.mxu0 }
  0xd2   : > { %v1947_v54 = vpop.eup %1946  ;;  %v305_v55 = vadd.f32 %v2312_v32, %v304_v53 }
  0xd3   : > { %1780 = vmatmul.msk.f32.gmra.mxu1 %vm217_vm0, %v1947_v54 }
  0xd4   : > { %1948 = vtanh.f32 %v305_v55 }
  0xd9   : > { %v307_v56 = vpop.f32.mrf.mxu0 }
  0xda   : > { %v1949_v57 = vpop.eup %1948  ;;  %v308_v58 = vadd.f32 %v2312_v32, %v307_v56 }
  0xdb   : > { %1781 = vmatmul.msk.f32.gmra.mxu1 %vm217_vm0, %v1949_v57 }
  0xdc   : > { %1950 = vtanh.f32 %v308_v58 }
  0xe1   : > { %v310_v59 = vpop.f32.mrf.mxu0 }
  0xe2   : > { %v1951_v60 = vpop.eup %1950  ;;  %v311_v61 = vadd.f32 %v2312_v32, %v310_v59 }
  0xe3   : > { %1782 = vmatmul.msk.f32.gmra.mxu1 %vm217_vm0, %v1951_v60 }
  0xe4   : > { %1952 = vtanh.f32 %v311_v61 }
  0xe9   : > { %v313_v62 = vpop.f32.mrf.mxu0 }
  0xea   : > { %v1953_v63 = vpop.eup %1952  ;;  %v314_v0 = vadd.f32 %v2312_v32, %v313_v62 }
  0xeb   : > { %1783 = vmatmul.msk.f32.gmra.mxu1 %vm217_vm0, %v1953_v63 }
  0xec   : > { %1954 = vtanh.f32 %v314_v0  ;;  %v635_v0 = vld [vmem:[#allocation2 + $0xf8] sm:$0xff] }
  0xed   : > { %694 = vmatpush.msra.mxu3 %v635_v0 }
  0xf1   : > { %v316_v1 = vpop.f32.mrf.mxu0 }
  0xf2   : > { %v1955_v2 = vpop.eup %1954  ;;  %v317_v3 = vadd.f32 %v2312_v32, %v316_v1  ;;  %v634_v1 = vld [vmem:[#allocation2 + $0xf0] sm:$0xff] }
  0xf3   : > { %1784 = vmatmul.msk.f32.gmra.mxu1 %vm217_vm0, %v1955_v2  ;;  %v633_v2 = vld [vmem:[#allocation2 + $0xe8] sm:$0xff]  ;;  %695 = vmatpush.msra.mxu3 %v634_v1 }
  0xf4   : > { %1956 = vtanh.f32 %v317_v3 }
  0xf5   : > { %696 = vmatpush.msra.mxu3 %v633_v2 }
  0xf9   : > { %v319_v4 = vpop.f32.mrf.mxu0 }
  0xfa   : > { %v1957_v5 = vpop.eup %1956  ;;  %v320_v6 = vadd.f32 %v2312_v32, %v319_v4 }
  0xfb   : > { %1785 = vmatmul.msk.f32.gmra.mxu1 %vm217_vm0, %v1957_v5 }
  0xfc   : > { %1958 = vtanh.f32 %v320_v6  ;;  %v632_v6 = vld [vmem:[#allocation2 + $0xe0] sm:$0xff] }
  0xfd   : > { %697 = vmatpush.msra.mxu3 %v632_v6 }
  0xff   : > { %698 = vmatpush.msra.mxu3 %v631_v7  ;;  %v899_v7 = vld [vmem:[#allocation2 + $0x178] sm:$0xff] }
 0x100   : > { %958 = vmatpush.msrb.mxu1 %v899_v7 }
 0x101   : > { %v322_v11 = vpop.f32.mrf.mxu0  ;;  %699 = vmatpush.msra.mxu3 %v630_v9 }
 0x102   : > { %v1959_v12 = vpop.eup %1958  ;;  %v323_v13 = vadd.f32 %v2312_v32, %v322_v11 }
 0x103   : > { %1786 = vmatmul.msk.f32.gmra.mxu1 %vm217_vm0, %v1959_v12  ;;  %v629_v12 = vld [vmem:[#allocation2 + $0xc8] sm:$0xff] }
 0x104   : > { %1960 = vtanh.f32 %v323_v13  ;;  %700 = vmatpush.msra.mxu3 %v629_v12  ;;  %v628_v13 = vld [vmem:[#allocation2 + $0xc0] sm:$0xff]  ;;  %v898_v12 = vld [vmem:[#allocation2 + $0x170] sm:$0xff] }
 0x105   : > { %959 = vmatpush.msrb.mxu1 %v898_v12 }
 0x106   : > { %701 = vmatpush.msra.mxu3 %v628_v13  ;;  %v2423_v13 = vld [vmem:[%s2649_s2 + $0x3] ss:$0 sm:$0xff] }
 0x109   : > { %v325_v18 = vpop.f32.mrf.mxu0 }
 0x10a   : > { %v1961_v19 = vpop.eup %1960  ;;  %v326_v20 = vadd.f32 %v2312_v32, %v325_v18 }
 0x10b   : > { %1787 = vmatmul.msk.f32.gmra.mxu1 %vm217_vm0, %v1961_v19  ;;  %v2386_v19 = vld [vmem:[%s2649_s2 + $0x2] ss:$0 sm:$0xff] }
 0x10c   : > { %1962 = vtanh.f32 %v326_v20 }
 0x111   : > { %v328_v21 = vpop.f32.mrf.mxu0 }
 0x112   : > { %v1963_v22 = vpop.eup %1962  ;;  %v329_v23 = vadd.f32 %v2312_v32, %v328_v21 }
 0x113   : > { %1788 = vmatmul.msk.f32.gmra.mxu1 %vm217_vm0, %v1963_v22  ;;  %v758_v22 = vld [vmem:[#allocation2 + $0x130] sm:$0xff] }
 0x114   : > { %1964 = vtanh.f32 %v329_v23  ;;  %819 = vmatpush.msrb.mxu0 %v758_v22 }
 0x11a   : > { %v1965_v24 = vpop.eup %1964 }
 0x11b   : > { %1789 = vmatmul.msk.f32.gmra.mxu1 %vm217_vm0, %v1965_v24 }
 0x120   : > { %v423_v26 = vpop.f32.mrf.mxu1 }
 0x121   : > { %v424_v27 = vadd.f32 %v2349_v25, %v423_v26 }
 0x123   : > { %1966 = vtanh.f32 %v424_v27 }
 0x128   : > { %v426_v28 = vpop.f32.mrf.mxu1 }
 0x129   : > { %v1967_v29 = vpop.eup %1966  ;;  %v427_v30 = vadd.f32 %v2349_v25, %v426_v28 }
 0x12a   : > { %1790 = vmatmul.msk.f32.vlgmr.msra.gmra.mxu2 %vm217_vm0, %v1967_v29  ;;  %v757_v29 = vld [vmem:[#allocation2 + $0x128] sm:$0xff] }
 0x12b   : > { %1968 = vtanh.f32 %v427_v30  ;;  %820 = vmatpush.msrb.mxu0 %v757_v29 }
 0x130   : > { %v429_v31 = vpop.f32.mrf.mxu1 }
 0x131   : > { %v1969_v32 = vpop.eup %1968  ;;  %v430_v33 = vadd.f32 %v2349_v25, %v429_v31 }
 0x132   : > { %1791 = vmatmul.msk.f32.gmra.mxu2 %vm217_vm0, %v1969_v32 }
 0x133   : > { %1970 = vtanh.f32 %v430_v33 }
 0x138   : > { %v432_v34 = vpop.f32.mrf.mxu1 }
 0x139   : > { %v1971_v35 = vpop.eup %1970  ;;  %v433_v36 = vadd.f32 %v2349_v25, %v432_v34 }
 0x13a   : > { %1792 = vmatmul.msk.f32.gmra.mxu2 %vm217_vm0, %v1971_v35 }
 0x13b   : > { %1972 = vtanh.f32 %v433_v36  ;;  %v756_v36 = vld [vmem:[#allocation2 + $0x120] sm:$0xff] }
 0x13c   : > { %821 = vmatpush.msrb.mxu0 %v756_v36 }
 0x140   : > { %v435_v37 = vpop.f32.mrf.mxu1 }
 0x141   : > { %v1973_v38 = vpop.eup %1972  ;;  %v436_v39 = vadd.f32 %v2349_v25, %v435_v37 }
 0x142   : > { %1793 = vmatmul.msk.f32.gmra.mxu2 %vm217_vm0, %v1973_v38 }
 0x143   : > { %1974 = vtanh.f32 %v436_v39 }
 0x148   : > { %v438_v40 = vpop.f32.mrf.mxu1 }
 0x149   : > { %v1975_v41 = vpop.eup %1974  ;;  %v439_v42 = vadd.f32 %v2349_v25, %v438_v40 }
 0x14a   : > { %1794 = vmatmul.msk.f32.gmra.mxu2 %vm217_vm0, %v1975_v41 }
 0x14b   : > { %1976 = vtanh.f32 %v439_v42 }
 0x150   : > { %v441_v43 = vpop.f32.mrf.mxu1 }
 0x151   : > { %v1977_v44 = vpop.eup %1976  ;;  %v442_v45 = vadd.f32 %v2349_v25, %v441_v43  ;;  %v755_v43 = vld [vmem:[#allocation2 + $0x118] sm:$0xff] }
 0x152   : > { %1795 = vmatmul.msk.f32.gmra.mxu2 %vm217_vm0, %v1977_v44  ;;  %822 = vmatpush.msrb.mxu0 %v755_v43  ;;  %v892_v43 = vld [vmem:[#allocation2 + $0x140] sm:$0xff] }
 0x153   : > { %1978 = vtanh.f32 %v442_v45 }
 0x158   : > { %v444_v46 = vpop.f32.mrf.mxu1 }
 0x159   : > { %v1979_v47 = vpop.eup %1978  ;;  %v445_v48 = vadd.f32 %v2349_v25, %v444_v46 }
 0x15a   : > { %1796 = vmatmul.msk.f32.gmra.mxu2 %vm217_vm0, %v1979_v47 }
 0x15b   : > { %1980 = vtanh.f32 %v445_v48 }
 0x160   : > { %v447_v49 = vpop.f32.mrf.mxu1 }
 0x161   : > { %v1981_v50 = vpop.eup %1980  ;;  %v448_v51 = vadd.f32 %v2349_v25, %v447_v49 }
 0x162   : > { %1797 = vmatmul.msk.f32.gmra.mxu2 %vm217_vm0, %v1981_v50  ;;  %v754_v50 = vld [vmem:[#allocation2 + $0x110] sm:$0xff] }
 0x163   : > { %1982 = vtanh.f32 %v448_v51  ;;  %823 = vmatpush.msrb.mxu0 %v754_v50  ;;  %v1039_v50 = vld [vmem:[#allocation2 + $0x1b8] sm:$0xff] }
 0x164   : > { %1098 = vmatpush.msrb.mxu2 %v1039_v50 }
 0x168   : > { %v450_v52 = vpop.f32.mrf.mxu1 }
 0x169   : > { %v1983_v53 = vpop.eup %1982  ;;  %v451_v54 = vadd.f32 %v2349_v25, %v450_v52 }
 0x16a   : > { %1798 = vmatmul.msk.f32.gmra.mxu2 %vm217_vm0, %v1983_v53 }
 0x16b   : > { %1984 = vtanh.f32 %v451_v54 }
 0x170   : > { %v453_v55 = vpop.f32.mrf.mxu1 }
 0x171   : > { %v1985_v56 = vpop.eup %1984  ;;  %v454_v57 = vadd.f32 %v2349_v25, %v453_v55 }
 0x172   : > { %1799 = vmatmul.msk.f32.gmra.mxu2 %vm217_vm0, %v1985_v56 }
 0x173   : > { %1986 = vtanh.f32 %v454_v57  ;;  %v753_v57 = vld [vmem:[#allocation2 + $0x108] sm:$0xff] }
 0x174   : > { %824 = vmatpush.msrb.mxu0 %v753_v57 }
 0x178   : > { %v456_v58 = vpop.f32.mrf.mxu1 }
 0x179   : > { %v1987_v59 = vpop.eup %1986  ;;  %v457_v60 = vadd.f32 %v2349_v25, %v456_v58 }
 0x17a   : > { %1800 = vmatmul.msk.f32.gmra.mxu2 %vm217_vm0, %v1987_v59 }
 0x17b   : > { %1988 = vtanh.f32 %v457_v60 }
 0x180   : > { %v459_v61 = vpop.f32.mrf.mxu1 }
 0x181   : > { %v1989_v62 = vpop.eup %1988  ;;  %v460_v63 = vadd.f32 %v2349_v25, %v459_v61  ;;  %v752_v61 = vld [vmem:[#allocation2 + $0x100] sm:$0xff] }
 0x182   : > { %1801 = vmatmul.msk.f32.gmra.mxu2 %vm217_vm0, %v1989_v62  ;;  %825 = vmatpush.msrb.mxu0 %v752_v61 }
 0x183   : > { %1990 = vtanh.f32 %v460_v63 }
 0x188   : > { %v462_v3 = vpop.f32.mrf.mxu1 }
 0x189   : > { %v1991_v4 = vpop.eup %1990  ;;  %v463_v5 = vadd.f32 %v2349_v25, %v462_v3 }
 0x18a   : > { %1802 = vmatmul.msk.f32.gmra.mxu2 %vm217_vm0, %v1991_v4 }
 0x18b   : > { %1992 = vtanh.f32 %v463_v5 }
 0x190   : > { %v465_v8 = vpop.f32.mrf.mxu1 }
 0x191   : > { %v1993_v10 = vpop.eup %1992  ;;  %v466_v11 = vadd.f32 %v2349_v25, %v465_v8 }
 0x192   : > { %1803 = vmatmul.msk.f32.gmra.mxu2 %vm217_vm0, %v1993_v10 }
 0x193   : > { %1994 = vtanh.f32 %v466_v11 }
 0x198   : > { %v468_v14 = vpop.f32.mrf.mxu1 }
 0x199   : > { %v1995_v15 = vpop.eup %1994  ;;  %v469_v16 = vadd.f32 %v2349_v25, %v468_v14 }
 0x19a   : > { %1804 = vmatmul.msk.f32.gmra.mxu2 %vm217_vm0, %v1995_v15 }
 0x19b   : > { %1996 = vtanh.f32 %v469_v16 }
 0x1a1   : > { %v1997_v18 = vpop.eup %1996 }
 0x1a2   : > { %1805 = vmatmul.msk.f32.gmra.mxu2 %vm217_vm0, %v1997_v18  ;;  %v897_v18 = vld [vmem:[#allocation2 + $0x168] sm:$0xff] }
 0x1a3   : > { %960 = vmatpush.msrb.mxu1 %v897_v18 }
 0x1ad   : > { %v563_v20 = vpop.f32.mrf.mxu2 }
 0x1ae   : > { %v564_v21 = vadd.f32 %v2386_v19, %v563_v20 }
 0x1b0   : > { %1998 = vtanh.f32 %v564_v21 }
 0x1b5   : > { %v566_v23 = vpop.f32.mrf.mxu2 }
 0x1b6   : > { %v1999_v24 = vpop.eup %1998  ;;  %v567_v25 = vadd.f32 %v2386_v19, %v566_v23  ;;  %v896_v23 = vld [vmem:[#allocation2 + $0x160] sm:$0xff] }
 0x1b7   : > { %1806 = vmatmul.msk.f32.vlgmr.msra.gmra.mxu3 %vm217_vm0, %v1999_v24  ;;  %961 = vmatpush.msrb.mxu1 %v896_v23 }
 0x1b8   : > { %2000 = vtanh.f32 %v567_v25 }
 0x1bd   : > { %v569_v26 = vpop.f32.mrf.mxu2 }
 0x1be   : > { %v2001_v27 = vpop.eup %2000  ;;  %v570_v28 = vadd.f32 %v2386_v19, %v569_v26 }
 0x1bf   : > { %1807 = vmatmul.msk.f32.gmra.mxu3 %vm217_vm0, %v2001_v27 }
 0x1c0   : > { %2002 = vtanh.f32 %v570_v28  ;;  %v895_v28 = vld [vmem:[#allocation2 + $0x158] sm:$0xff] }
 0x1c1   : > { %962 = vmatpush.msrb.mxu1 %v895_v28 }
 0x1c5   : > { %v572_v30 = vpop.f32.mrf.mxu2 }
 0x1c6   : > { %v2003_v31 = vpop.eup %2002  ;;  %v573_v32 = vadd.f32 %v2386_v19, %v572_v30 }
 0x1c7   : > { %1808 = vmatmul.msk.f32.gmra.mxu3 %vm217_vm0, %v2003_v31 }
 0x1c8   : > { %2004 = vtanh.f32 %v573_v32 }
 0x1cd   : > { %v575_v33 = vpop.f32.mrf.mxu2 }
 0x1ce   : > { %v2005_v34 = vpop.eup %2004  ;;  %v576_v35 = vadd.f32 %v2386_v19, %v575_v33  ;;  %v894_v33 = vld [vmem:[#allocation2 + $0x150] sm:$0xff] }
 0x1cf   : > { %1809 = vmatmul.msk.f32.gmra.mxu3 %vm217_vm0, %v2005_v34  ;;  %963 = vmatpush.msrb.mxu1 %v894_v33 }
 0x1d0   : > { %2006 = vtanh.f32 %v576_v35 }
 0x1d5   : > { %v578_v37 = vpop.f32.mrf.mxu2 }
 0x1d6   : > { %v2007_v38 = vpop.eup %2006  ;;  %v579_v39 = vadd.f32 %v2386_v19, %v578_v37 }
 0x1d7   : > { %1810 = vmatmul.msk.f32.gmra.mxu3 %vm217_vm0, %v2007_v38  ;;  %v893_v38 = vld [vmem:[#allocation2 + $0x148] sm:$0xff] }
 0x1d8   : > { %2008 = vtanh.f32 %v579_v39  ;;  %964 = vmatpush.msrb.mxu1 %v893_v38 }
 0x1da   : > { %965 = vmatpush.msrb.mxu1 %v892_v43 }
 0x1dd   : > { %v581_v40 = vpop.f32.mrf.mxu2 }
 0x1de   : > { %v2009_v41 = vpop.eup %2008  ;;  %v582_v42 = vadd.f32 %v2386_v19, %v581_v40 }
 0x1df   : > { %1811 = vmatmul.msk.f32.gmra.mxu3 %vm217_vm0, %v2009_v41 }
 0x1e0   : > { %2010 = vtanh.f32 %v582_v42 }
 0x1e5   : > { %v584_v44 = vpop.f32.mrf.mxu2 }
 0x1e6   : > { %v2011_v45 = vpop.eup %2010  ;;  %v585_v46 = vadd.f32 %v2386_v19, %v584_v44 }
 0x1e7   : > { %1812 = vmatmul.msk.f32.gmra.mxu3 %vm217_vm0, %v2011_v45 }
 0x1e8   : > { %2012 = vtanh.f32 %v585_v46 }
 0x1ed   : > { %v587_v47 = vpop.f32.mrf.mxu2 }
 0x1ee   : > { %v2013_v48 = vpop.eup %2012  ;;  %v588_v49 = vadd.f32 %v2386_v19, %v587_v47 }
 0x1ef   : > { %1813 = vmatmul.msk.f32.gmra.mxu3 %vm217_vm0, %v2013_v48 }
 0x1f0   : > { %2014 = vtanh.f32 %v588_v49 }
 0x1f5   : > { %v590_v51 = vpop.f32.mrf.mxu2 }
 0x1f6   : > { %v2015_v52 = vpop.eup %2014  ;;  %v591_v53 = vadd.f32 %v2386_v19, %v590_v51 }
 0x1f7   : > { %1814 = vmatmul.msk.f32.gmra.mxu3 %vm217_vm0, %v2015_v52 }
 0x1f8   : > { %2016 = vtanh.f32 %v591_v53  ;;  %v2476_v53 = vld [vmem:[%s2649_s2 + $0x4] ss:$0 sm:$0xff] }
 0x1fd   : > { %v593_v54 = vpop.f32.mrf.mxu2 }
 0x1fe   : > { %v2017_v55 = vpop.eup %2016  ;;  %v594_v56 = vadd.f32 %v2386_v19, %v593_v54 }
 0x1ff   : > { %1815 = vmatmul.msk.f32.gmra.mxu3 %vm217_vm0, %v2017_v55 }
 0x200   : > { %2018 = vtanh.f32 %v594_v56  ;;  %v1038_v56 = vld [vmem:[#allocation2 + $0x1b0] sm:$0xff] }
 0x201   : > { %1099 = vmatpush.msrb.mxu2 %v1038_v56  ;;  %v1177_v56 = vld [vmem:[#allocation2 + $0x1e8] sm:$0xff] }
 0x205   : > { %v596_v58 = vpop.f32.mrf.mxu2 }
 0x206   : > { %v2019_v59 = vpop.eup %2018  ;;  %v597_v60 = vadd.f32 %v2386_v19, %v596_v58 }
 0x207   : > { %1816 = vmatmul.msk.f32.gmra.mxu3 %vm217_vm0, %v2019_v59 }
 0x208   : > { %2020 = vtanh.f32 %v597_v60 }
 0x20d   : > { %v599_v62 = vpop.f32.mrf.mxu2 }
 0x20e   : > { %v2021_v63 = vpop.eup %2020  ;;  %v600_v0 = vadd.f32 %v2386_v19, %v599_v62 }
 0x20f   : > { %1817 = vmatmul.msk.f32.gmra.mxu3 %vm217_vm0, %v2021_v63  ;;  %v1037_v63 = vld [vmem:[#allocation2 + $0x1a8] sm:$0xff] }
 0x210   : > { %2022 = vtanh.f32 %v600_v0  ;;  %1100 = vmatpush.msrb.mxu2 %v1037_v63  ;;  %v1176_v63 = vld [vmem:[#allocation2 + $0x1e0] sm:$0xff] }
 0x215   : > { %v602_v1 = vpop.f32.mrf.mxu2 }
 0x216   : > { %v2023_v2 = vpop.eup %2022  ;;  %v603_v3 = vadd.f32 %v2386_v19, %v602_v1 }
 0x217   : > { %1818 = vmatmul.msk.f32.gmra.mxu3 %vm217_vm0, %v2023_v2 }
 0x218   : > { %2024 = vtanh.f32 %v603_v3 }
 0x21d   : > { %v605_v4 = vpop.f32.mrf.mxu2 }
 0x21e   : > { %v2025_v5 = vpop.eup %2024  ;;  %v606_v6 = vadd.f32 %v2386_v19, %v605_v4 }
 0x21f   : > { %1819 = vmatmul.msk.f32.gmra.mxu3 %vm217_vm0, %v2025_v5 }
 0x220   : > { %2026 = vtanh.f32 %v606_v6  ;;  %v1036_v6 = vld [vmem:[#allocation2 + $0x1a0] sm:$0xff] }
 0x221   : > { %1101 = vmatpush.msrb.mxu2 %v1036_v6  ;;  %v1175_v6 = vld [vmem:[#allocation2 + $0x1d8] sm:$0xff] }
 0x225   : > { %v608_v8 = vpop.f32.mrf.mxu2 }
 0x226   : > { %v2027_v9 = vpop.eup %2026  ;;  %v609_v10 = vadd.f32 %v2386_v19, %v608_v8 }
 0x227   : > { %1820 = vmatmul.msk.f32.gmra.mxu3 %vm217_vm0, %v2027_v9 }
 0x228   : > { %2028 = vtanh.f32 %v609_v10 }
 0x22e   : > { %v2029_v11 = vpop.eup %2028 }
 0x22f   : > { %1821 = vmatmul.msk.f32.gmra.mxu3 %vm217_vm0, %v2029_v11 }
 0x23a   : > { %v703_v14 = vpop.f32.mrf.mxu3 }
 0x23b   : > { %v704_v15 = vadd.f32 %v2423_v13, %v703_v14 }
 0x23d   : > { %1599 = vrot.lane.b32.xlu0 %v704_v15, %s2235_s7  ;;  %1822 = vmatmul.msk.f32.vlgmr.msrb.gmra.mxu0 %vm217_vm0, %v704_v15 }
 0x242   : > { %v706_v16 = vpop.f32.mrf.mxu3 }
 0x243   : > { %v707_v17 = vadd.f32 %v2423_v13, %v706_v16 }
 0x245   : > { %1601 = vrot.lane.b32.xlu0 %v707_v17, %s2235_s7  ;;  %1823 = vmatmul.msk.f32.gmra.mxu0 %vm217_vm0, %v707_v17 }
 0x24a   : > { %v709_v19 = vpop.f32.mrf.mxu3 }
 0x24b   : > { %v710_v20 = vadd.f32 %v2423_v13, %v709_v19 }
 0x24d   : > { %1603 = vrot.lane.b32.xlu1 %v710_v20, %s2235_s7  ;;  %1824 = vmatmul.msk.f32.gmra.mxu0 %vm217_vm0, %v710_v20  ;;  %v1034_v20 = vld [vmem:[#allocation2 + $0x190] sm:$0xff] }
 0x252   : > { %v712_v21 = vpop.f32.mrf.mxu3 }
 0x253   : > { %v713_v22 = vadd.f32 %v2423_v13, %v712_v21 }
 0x255   : > { %1605 = vrot.lane.b32.xlu1 %v713_v22, %s2235_s7  ;;  %1825 = vmatmul.msk.f32.gmra.mxu0 %vm217_vm0, %v713_v22 }
 0x25a   : > { %v715_v24 = vpop.f32.mrf.mxu3 }
 0x25b   : > { %v716_v25 = vadd.f32 %v2423_v13, %v715_v24 }
 0x25d   : > { %1607 = vrot.lane.b32.xlu2 %v716_v25, %s2235_s7  ;;  %1826 = vmatmul.msk.f32.gmra.mxu0 %vm217_vm0, %v716_v25 }
 0x262   : > { %v718_v26 = vpop.f32.mrf.mxu3 }
 0x263   : > { %v719_v27 = vadd.f32 %v2423_v13, %v718_v26 }
 0x265   : > { %1609 = vrot.lane.b32.xlu2 %v719_v27, %s2235_s7  ;;  %1827 = vmatmul.msk.f32.gmra.mxu0 %vm217_vm0, %v719_v27  ;;  %v1033_v27 = vld [vmem:[#allocation2 + $0x188] sm:$0xff] }
 0x26a   : > { %v721_v29 = vpop.f32.mrf.mxu3 }
 0x26b   : > { %v722_v30 = vadd.f32 %v2423_v13, %v721_v29 }
 0x26d   : > { %1611 = vrot.lane.b32.xlu0 %v722_v30, %s2235_s7  ;;  %1828 = vmatmul.msk.f32.gmra.mxu0 %vm217_vm0, %v722_v30 }
 0x272   : > { %v724_v31 = vpop.f32.mrf.mxu3 }
 0x273   : > { %v725_v32 = vadd.f32 %v2423_v13, %v724_v31  ;;  %v1032_v31 = vld [vmem:[#allocation2 + $0x180] sm:$0xff] }
 0x275   : > { %1613 = vrot.lane.b32.xlu1 %v725_v32, %s2235_s7  ;;  %1829 = vmatmul.msk.f32.gmra.mxu0 %vm217_vm0, %v725_v32 }
 0x27a   : > { %v727_v34 = vpop.f32.mrf.mxu3 }
 0x27b   : > { %v728_v35 = vadd.f32 %v2423_v13, %v727_v34 }
 0x27d   : > { %1615 = vrot.lane.b32.xlu2 %v728_v35, %s2235_s7  ;;  %1830 = vmatmul.msk.f32.gmra.mxu0 %vm217_vm0, %v728_v35 }
 0x282   : > { %v730_v36 = vpop.f32.mrf.mxu3 }
 0x283   : > { %v731_v37 = vadd.f32 %v2423_v13, %v730_v36 }
 0x285   : > { %1617 = vrot.lane.b32.xlu0 %v731_v37, %s2235_s7  ;;  %1831 = vmatmul.msk.f32.gmra.mxu0 %vm217_vm0, %v731_v37 }
 0x28a   : > { %v733_v39 = vpop.f32.mrf.mxu3 }
 0x28b   : > { %v734_v40 = vadd.f32 %v2423_v13, %v733_v39 }
 0x28d   : > { %1619 = vrot.lane.b32.xlu1 %v734_v40, %s2235_s7  ;;  %1832 = vmatmul.msk.f32.gmra.mxu0 %vm217_vm0, %v734_v40 }
 0x292   : > { %v736_v41 = vpop.f32.mrf.mxu3 }
 0x293   : > { %v737_v42 = vadd.f32 %v2423_v13, %v736_v41 }
 0x295   : > { %1621 = vrot.lane.b32.xlu2 %v737_v42, %s2235_s7  ;;  %1833 = vmatmul.msk.f32.gmra.mxu0 %vm217_vm0, %v737_v42 }
 0x29a   : > { %v739_v44 = vpop.f32.mrf.mxu3 }
 0x29b   : > { %v740_v45 = vadd.f32 %v2423_v13, %v739_v44  ;;  %v1179_v44 = vld [vmem:[#allocation2 + $0x1f8] sm:$0xff] }
 0x29c   : > { %1238 = vmatpush.msrb.mxu3 %v1179_v44 }
 0x29d   : > { %1623 = vrot.lane.b32.xlu0 %v740_v45, %s2235_s7  ;;  %1834 = vmatmul.msk.f32.gmra.mxu0 %vm217_vm0, %v740_v45 }
 0x2a2   : > { %v742_v46 = vpop.f32.mrf.mxu3 }
 0x2a3   : > { %v743_v47 = vadd.f32 %v2423_v13, %v742_v46  ;;  %v2513_v46 = vld [vmem:[%s2649_s2 + $0x5] ss:$0 sm:$0xff] }
 0x2a5   : > { %1625 = vrot.lane.b32.xlu1 %v743_v47, %s2235_s7  ;;  %1835 = vmatmul.msk.f32.gmra.mxu0 %vm217_vm0, %v743_v47 }
 0x2aa   : > { %v745_v48 = vpop.f32.mrf.mxu3 }
 0x2ab   : > { %v746_v49 = vadd.f32 %v2423_v13, %v745_v48 }
 0x2ad   : > { %1627 = vrot.lane.b32.xlu2 %v746_v49, %s2235_s7  ;;  %1836 = vmatmul.msk.f32.gmra.mxu0 %vm217_vm0, %v746_v49  ;;  %v1178_v49 = vld [vmem:[#allocation2 + $0x1f0] sm:$0xff] }
 0x2ae   : > { %1239 = vmatpush.msrb.mxu3 %v1178_v49 }
 0x2b0   : > { %1240 = vmatpush.msrb.mxu3 %v1177_v56 }
 0x2b2   : > { %v748_v51 = vpop.f32.mrf.mxu3  ;;  %1241 = vmatpush.msrb.mxu3 %v1176_v63 }
 0x2b3   : > { %v749_v52 = vadd.f32 %v2423_v13, %v748_v51  ;;  %v1035_v13 = vld [vmem:[#allocation2 + $0x198] sm:$0xff] }
 0x2b4   : > { %1102 = vmatpush.msrb.mxu2 %v1035_v13  ;;  %1242 = vmatpush.msrb.mxu3 %v1175_v6  ;;  %v1174_v13 = vld [vmem:[#allocation2 + $0x1d0] sm:$0xff] }
 0x2b5   : > { %1629 = vrot.lane.b32.xlu0 %v749_v52, %s2235_s7  ;;  %1837 = vmatmul.msk.f32.gmra.mxu0 %vm217_vm0, %v749_v52 }
 0x2b6   : > { %1103 = vmatpush.msrb.mxu2 %v1034_v20  ;;  %1243 = vmatpush.msrb.mxu3 %v1174_v13  ;;  %v1173_v20 = vld [vmem:[#allocation2 + $0x1c8] sm:$0xff] }
 0x2b8   : > { %1104 = vmatpush.msrb.mxu2 %v1033_v27  ;;  %1244 = vmatpush.msrb.mxu3 %v1173_v20  ;;  %v1172_v27 = vld [vmem:[#allocation2 + $0x1c0] sm:$0xff] }
 0x2ba   : > { %v827_v54 = vpop.f32.mrf.mxu0  ;;  %1105 = vmatpush.msrb.mxu2 %v1032_v31  ;;  %1245 = vmatpush.msrb.mxu3 %v1172_v27 }
 0x2bb   : > { %v828_v55 = vadd.f32 %v2476_v53, %v827_v54 }
 0x2bd   : > { %2030 = vtanh.f32 %v828_v55 }
 0x2c2   : > { %v830_v57 = vpop.f32.mrf.mxu0 }
 0x2c3   : > { %v2031_v58 = vpop.eup %2030  ;;  %v831_v59 = vadd.f32 %v2476_v53, %v830_v57 }
 0x2c4   : > { %1838 = vmatmul.msk.f32.vlgmr.msrb.gmra.mxu1 %vm217_vm0, %v2031_v58 }
 0x2c5   : > { %2032 = vtanh.f32 %v831_v59 }
 0x2ca   : > { %v833_v60 = vpop.f32.mrf.mxu0 }
 0x2cb   : > { %v2033_v61 = vpop.eup %2032  ;;  %v834_v62 = vadd.f32 %v2476_v53, %v833_v60 }
 0x2cc   : > { %1839 = vmatmul.msk.f32.gmra.mxu1 %vm217_vm0, %v2033_v61 }
 0x2cd   : > { %2034 = vtanh.f32 %v834_v62 }
 0x2d2   : > { %v836_v0 = vpop.f32.mrf.mxu0 }
 0x2d3   : > { %v2035_v1 = vpop.eup %2034  ;;  %v837_v2 = vadd.f32 %v2476_v53, %v836_v0 }
 0x2d4   : > { %1840 = vmatmul.msk.f32.gmra.mxu1 %vm217_vm0, %v2035_v1 }
 0x2d5   : > { %2036 = vtanh.f32 %v837_v2 }
 0x2da   : > { %v839_v3 = vpop.f32.mrf.mxu0 }
 0x2db   : > { %v2037_v4 = vpop.eup %2036  ;;  %v840_v5 = vadd.f32 %v2476_v53, %v839_v3 }
 0x2dc   : > { %1841 = vmatmul.msk.f32.gmra.mxu1 %vm217_vm0, %v2037_v4 }
 0x2dd   : > { %2038 = vtanh.f32 %v840_v5 }
 0x2e2   : > { %v842_v7 = vpop.f32.mrf.mxu0 }
 0x2e3   : > { %v2039_v8 = vpop.eup %2038  ;;  %v843_v9 = vadd.f32 %v2476_v53, %v842_v7 }
 0x2e4   : > { %1842 = vmatmul.msk.f32.gmra.mxu1 %vm217_vm0, %v2039_v8 }
 0x2e5   : > { %2040 = vtanh.f32 %v843_v9 }
 0x2ea   : > { %v845_v10 = vpop.f32.mrf.mxu0 }
 0x2eb   : > { %v2041_v11 = vpop.eup %2040  ;;  %v846_v12 = vadd.f32 %v2476_v53, %v845_v10 }
 0x2ec   : > { %1843 = vmatmul.msk.f32.gmra.mxu1 %vm217_vm0, %v2041_v11 }
 0x2ed   : > { %2042 = vtanh.f32 %v846_v12 }
 0x2f2   : > { %v848_v14 = vpop.f32.mrf.mxu0 }
 0x2f3   : > { %v2043_v15 = vpop.eup %2042  ;;  %v849_v16 = vadd.f32 %v2476_v53, %v848_v14 }
 0x2f4   : > { %1844 = vmatmul.msk.f32.gmra.mxu1 %vm217_vm0, %v2043_v15 }
 0x2f5   : > { %2044 = vtanh.f32 %v849_v16 }
 0x2fa   : > { %v851_v17 = vpop.f32.mrf.mxu0 }
 0x2fb   : > { %v2045_v18 = vpop.eup %2044  ;;  %v852_v19 = vadd.f32 %v2476_v53, %v851_v17 }
 0x2fc   : > { %1845 = vmatmul.msk.f32.gmra.mxu1 %vm217_vm0, %v2045_v18 }
 0x2fd   : > { %2046 = vtanh.f32 %v852_v19 }
 0x302   : > { %v854_v21 = vpop.f32.mrf.mxu0 }
 0x303   : > { %v2047_v22 = vpop.eup %2046  ;;  %v855_v23 = vadd.f32 %v2476_v53, %v854_v21 }
 0x304   : > { %1846 = vmatmul.msk.f32.gmra.mxu1 %vm217_vm0, %v2047_v22 }
 0x305   : > { %2048 = vtanh.f32 %v855_v23 }
 0x30a   : > { %v857_v24 = vpop.f32.mrf.mxu0 }
 0x30b   : > { %v2049_v25 = vpop.eup %2048  ;;  %v858_v26 = vadd.f32 %v2476_v53, %v857_v24 }
 0x30c   : > { %1847 = vmatmul.msk.f32.gmra.mxu1 %vm217_vm0, %v2049_v25 }
 0x30d   : > { %2050 = vtanh.f32 %v858_v26 }
 0x312   : > { %v860_v28 = vpop.f32.mrf.mxu0 }
 0x313   : > { %v2051_v29 = vpop.eup %2050  ;;  %v861_v30 = vadd.f32 %v2476_v53, %v860_v28 }
 0x314   : > { %1848 = vmatmul.msk.f32.gmra.mxu1 %vm217_vm0, %v2051_v29 }
 0x315   : > { %2052 = vtanh.f32 %v861_v30 }
 0x31a   : > { %v863_v32 = vpop.f32.mrf.mxu0 }
 0x31b   : > { %v2053_v33 = vpop.eup %2052  ;;  %v864_v34 = vadd.f32 %v2476_v53, %v863_v32 }
 0x31c   : > { %1849 = vmatmul.msk.f32.gmra.mxu1 %vm217_vm0, %v2053_v33 }
 0x31d   : > { %2054 = vtanh.f32 %v864_v34 }
 0x322   : > { %v866_v35 = vpop.f32.mrf.mxu0 }
 0x323   : > { %v2055_v36 = vpop.eup %2054  ;;  %v867_v37 = vadd.f32 %v2476_v53, %v866_v35 }
 0x324   : > { %1850 = vmatmul.msk.f32.gmra.mxu1 %vm217_vm0, %v2055_v36 }
 0x325   : > { %2056 = vtanh.f32 %v867_v37 }
 0x32a   : > { %v869_v38 = vpop.f32.mrf.mxu0 }
 0x32b   : > { %v2057_v39 = vpop.eup %2056  ;;  %v870_v40 = vadd.f32 %v2476_v53, %v869_v38  ;;  %v2550_v38 = vld [vmem:[%s2649_s2 + $0x6] ss:$0 sm:$0xff] }
 0x32c   : > { %1851 = vmatmul.msk.f32.gmra.mxu1 %vm217_vm0, %v2057_v39 }
 0x32d   : > { %2058 = vtanh.f32 %v870_v40 }
 0x332   : > { %v872_v41 = vpop.f32.mrf.mxu0 }
 0x333   : > { %v2059_v42 = vpop.eup %2058  ;;  %v873_v43 = vadd.f32 %v2476_v53, %v872_v41 }
 0x334   : > { %1852 = vmatmul.msk.f32.gmra.mxu1 %vm217_vm0, %v2059_v42 }
 0x335   : > { %2060 = vtanh.f32 %v873_v43 }
 0x33b   : > { %v2061_v45 = vpop.eup %2060 }
 0x33c   : > { %1853 = vmatmul.msk.f32.gmra.mxu1 %vm217_vm0, %v2061_v45 }
 0x341   : > { %v967_v47 = vpop.f32.mrf.mxu1 }
 0x342   : > { %v968_v48 = vadd.f32 %v2513_v46, %v967_v47 }
 0x344   : > { %2062 = vtanh.f32 %v968_v48 }
 0x349   : > { %v970_v50 = vpop.f32.mrf.mxu1 }
 0x34a   : > { %v2063_v51 = vpop.eup %2062  ;;  %v971_v52 = vadd.f32 %v2513_v46, %v970_v50 }
 0x34b   : > { %1854 = vmatmul.msk.f32.vlgmr.msrb.gmra.mxu2 %vm217_vm0, %v2063_v51 }
 0x34c   : > { %2064 = vtanh.f32 %v971_v52 }
 0x351   : > { %v973_v53 = vpop.f32.mrf.mxu1 }
 0x352   : > { %v2065_v54 = vpop.eup %2064  ;;  %v974_v55 = vadd.f32 %v2513_v46, %v973_v53 }
 0x353   : > { %1855 = vmatmul.msk.f32.gmra.mxu2 %vm217_vm0, %v2065_v54 }
 0x354   : > { %2066 = vtanh.f32 %v974_v55 }
 0x359   : > { %v976_v57 = vpop.f32.mrf.mxu1 }
 0x35a   : > { %v2067_v58 = vpop.eup %2066  ;;  %v977_v59 = vadd.f32 %v2513_v46, %v976_v57 }
 0x35b   : > { %1856 = vmatmul.msk.f32.gmra.mxu2 %vm217_vm0, %v2067_v58 }
 0x35c   : > { %2068 = vtanh.f32 %v977_v59 }
 0x361   : > { %v979_v60 = vpop.f32.mrf.mxu1 }
 0x362   : > { %v2069_v61 = vpop.eup %2068  ;;  %v980_v62 = vadd.f32 %v2513_v46, %v979_v60 }
 0x363   : > { %1857 = vmatmul.msk.f32.gmra.mxu2 %vm217_vm0, %v2069_v61 }
 0x364   : > { %2070 = vtanh.f32 %v980_v62 }
 0x369   : > { %v982_v0 = vpop.f32.mrf.mxu1 }
 0x36a   : > { %v2071_v1 = vpop.eup %2070  ;;  %v983_v2 = vadd.f32 %v2513_v46, %v982_v0 }
 0x36b   : > { %1858 = vmatmul.msk.f32.gmra.mxu2 %vm217_vm0, %v2071_v1 }
 0x36c   : > { %2072 = vtanh.f32 %v983_v2 }
 0x371   : > { %v985_v3 = vpop.f32.mrf.mxu1 }
 0x372   : > { %v2073_v4 = vpop.eup %2072  ;;  %v986_v5 = vadd.f32 %v2513_v46, %v985_v3 }
 0x373   : > { %1859 = vmatmul.msk.f32.gmra.mxu2 %vm217_vm0, %v2073_v4 }
 0x374   : > { %2074 = vtanh.f32 %v986_v5 }
 0x379   : > { %v988_v7 = vpop.f32.mrf.mxu1 }
 0x37a   : > { %v2075_v8 = vpop.eup %2074  ;;  %v989_v9 = vadd.f32 %v2513_v46, %v988_v7 }
 0x37b   : > { %1860 = vmatmul.msk.f32.gmra.mxu2 %vm217_vm0, %v2075_v8 }
 0x37c   : > { %2076 = vtanh.f32 %v989_v9 }
 0x381   : > { %v991_v10 = vpop.f32.mrf.mxu1 }
 0x382   : > { %v2077_v11 = vpop.eup %2076  ;;  %v992_v12 = vadd.f32 %v2513_v46, %v991_v10 }
 0x383   : > { %1861 = vmatmul.msk.f32.gmra.mxu2 %vm217_vm0, %v2077_v11 }
 0x384   : > { %2078 = vtanh.f32 %v992_v12 }
 0x389   : > { %v994_v14 = vpop.f32.mrf.mxu1 }
 0x38a   : > { %v2079_v15 = vpop.eup %2078  ;;  %v995_v16 = vadd.f32 %v2513_v46, %v994_v14 }
 0x38b   : > { %1862 = vmatmul.msk.f32.gmra.mxu2 %vm217_vm0, %v2079_v15 }
 0x38c   : > { %2080 = vtanh.f32 %v995_v16 }
 0x391   : > { %v997_v17 = vpop.f32.mrf.mxu1 }
 0x392   : > { %v2081_v18 = vpop.eup %2080  ;;  %v998_v19 = vadd.f32 %v2513_v46, %v997_v17 }
 0x393   : > { %1863 = vmatmul.msk.f32.gmra.mxu2 %vm217_vm0, %v2081_v18 }
 0x394   : > { %2082 = vtanh.f32 %v998_v19 }
 0x399   : > { %v1000_v21 = vpop.f32.mrf.mxu1 }
 0x39a   : > { %v2083_v22 = vpop.eup %2082  ;;  %v1001_v23 = vadd.f32 %v2513_v46, %v1000_v21 }
 0x39b   : > { %1864 = vmatmul.msk.f32.gmra.mxu2 %vm217_vm0, %v2083_v22 }
 0x39c   : > { %2084 = vtanh.f32 %v1001_v23  ;;  %v2587_v23 = vld [vmem:[%s2649_s2 + $0x7] ss:$0 sm:$0xff] }
 0x3a1   : > { %v1003_v24 = vpop.f32.mrf.mxu1 }
 0x3a2   : > { %v2085_v25 = vpop.eup %2084  ;;  %v1004_v26 = vadd.f32 %v2513_v46, %v1003_v24 }
 0x3a3   : > { %1865 = vmatmul.msk.f32.gmra.mxu2 %vm217_vm0, %v2085_v25 }
 0x3a4   : > { %2086 = vtanh.f32 %v1004_v26 }
 0x3a9   : > { %v1006_v28 = vpop.f32.mrf.mxu1 }
 0x3aa   : > { %v2087_v29 = vpop.eup %2086  ;;  %v1007_v30 = vadd.f32 %v2513_v46, %v1006_v28 }
 0x3ab   : > { %1866 = vmatmul.msk.f32.gmra.mxu2 %vm217_vm0, %v2087_v29 }
 0x3ac   : > { %2088 = vtanh.f32 %v1007_v30 }
 0x3b1   : > { %v1009_v31 = vpop.f32.mrf.mxu1 }
 0x3b2   : > { %v2089_v32 = vpop.eup %2088  ;;  %v1010_v33 = vadd.f32 %v2513_v46, %v1009_v31 }
 0x3b3   : > { %1867 = vmatmul.msk.f32.gmra.mxu2 %vm217_vm0, %v2089_v32 }
 0x3b4   : > { %2090 = vtanh.f32 %v1010_v33 }
 0x3b9   : > { %v1012_v34 = vpop.f32.mrf.mxu1 }
 0x3ba   : > { %v2091_v35 = vpop.eup %2090  ;;  %v1013_v36 = vadd.f32 %v2513_v46, %v1012_v34 }
 0x3bb   : > { %1868 = vmatmul.msk.f32.gmra.mxu2 %vm217_vm0, %v2091_v35 }
 0x3bc   : > { %2092 = vtanh.f32 %v1013_v36 }
 0x3c2   : > { %v2093_v37 = vpop.eup %2092 }
 0x3c3   : > { %1869 = vmatmul.msk.f32.gmra.mxu2 %vm217_vm0, %v2093_v37 }
 0x3ce   : > { %v1107_v39 = vpop.f32.mrf.mxu2 }
 0x3cf   : > { %v1108_v40 = vadd.f32 %v2550_v38, %v1107_v39 }
 0x3d1   : > { %2094 = vtanh.f32 %v1108_v40 }
 0x3d6   : > { %v1110_v41 = vpop.f32.mrf.mxu2 }
 0x3d7   : > { %v2095_v42 = vpop.eup %2094  ;;  %v1111_v43 = vadd.f32 %v2550_v38, %v1110_v41 }
 0x3d8   : > { %1870 = vmatmul.msk.f32.vlgmr.msrb.gmra.mxu3 %vm217_vm0, %v2095_v42 }
 0x3d9   : > { %2096 = vtanh.f32 %v1111_v43 }
 0x3de   : > { %v1113_v44 = vpop.f32.mrf.mxu2 }
 0x3df   : > { %v2097_v45 = vpop.eup %2096  ;;  %v1114_v46 = vadd.f32 %v2550_v38, %v1113_v44 }
 0x3e0   : > { %1871 = vmatmul.msk.f32.gmra.mxu3 %vm217_vm0, %v2097_v45 }
 0x3e1   : > { %2098 = vtanh.f32 %v1114_v46 }
 0x3e6   : > { %v1116_v47 = vpop.f32.mrf.mxu2 }
 0x3e7   : > { %v2099_v48 = vpop.eup %2098  ;;  %v1117_v49 = vadd.f32 %v2550_v38, %v1116_v47 }
 0x3e8   : > { %1872 = vmatmul.msk.f32.gmra.mxu3 %vm217_vm0, %v2099_v48 }
 0x3e9   : > { %2100 = vtanh.f32 %v1117_v49  ;;  %v1600_v49 = vpop.permute.xlu0 %1599 }
 0x3ee   : > { %v1119_v50 = vpop.f32.mrf.mxu2 }
 0x3ef   : > { %v2101_v51 = vpop.eup %2100  ;;  %v1120_v52 = vadd.f32 %v2550_v38, %v1119_v50 }
 0x3f0   : > { %1873 = vmatmul.msk.f32.gmra.mxu3 %vm217_vm0, %v2101_v51 }
 0x3f1   : > { %2102 = vtanh.f32 %v1120_v52 }
 0x3f6   : > { %v1122_v53 = vpop.f32.mrf.mxu2 }
 0x3f7   : > { %v2103_v54 = vpop.eup %2102  ;;  %v1123_v55 = vadd.f32 %v2550_v38, %v1122_v53 }
 0x3f8   : > { %1874 = vmatmul.msk.f32.gmra.mxu3 %vm217_vm0, %v2103_v54 }
 0x3f9   : > { %2104 = vtanh.f32 %v1123_v55 }
 0x3fe   : > { %v1125_v56 = vpop.f32.mrf.mxu2 }
 0x3ff   : > { %v2105_v57 = vpop.eup %2104  ;;  %v1126_v58 = vadd.f32 %v2550_v38, %v1125_v56 }
 0x400   : > { %1875 = vmatmul.msk.f32.gmra.mxu3 %vm217_vm0, %v2105_v57 }
 0x401   : > { %2106 = vtanh.f32 %v1126_v58 }
 0x406   : > { %v1128_v59 = vpop.f32.mrf.mxu2 }
 0x407   : > { %v2107_v60 = vpop.eup %2106  ;;  %v1129_v61 = vadd.f32 %v2550_v38, %v1128_v59 }
 0x408   : > { %1876 = vmatmul.msk.f32.gmra.mxu3 %vm217_vm0, %v2107_v60 }
 0x409   : > { %2108 = vtanh.f32 %v1129_v61 }
 0x40e   : > { %v1131_v62 = vpop.f32.mrf.mxu2 }
 0x40f   : > { %v2109_v63 = vpop.eup %2108  ;;  %v1132_v0 = vadd.f32 %v2550_v38, %v1131_v62 }
 0x410   : > { %1877 = vmatmul.msk.f32.gmra.mxu3 %vm217_vm0, %v2109_v63 }
 0x411   : > { %2110 = vtanh.f32 %v1132_v0 }
 0x416   : > { %v1134_v1 = vpop.f32.mrf.mxu2 }
 0x417   : > { %v2111_v2 = vpop.eup %2110  ;;  %v1135_v3 = vadd.f32 %v2550_v38, %v1134_v1 }
 0x418   : > { %1878 = vmatmul.msk.f32.gmra.mxu3 %vm217_vm0, %v2111_v2 }
 0x419   : > { %2112 = vtanh.f32 %v1135_v3 }
 0x41e   : > { %v1137_v4 = vpop.f32.mrf.mxu2 }
 0x41f   : > { %v2113_v5 = vpop.eup %2112  ;;  %v1138_v6 = vadd.f32 %v2550_v38, %v1137_v4 }
 0x420   : > { %1879 = vmatmul.msk.f32.gmra.mxu3 %vm217_vm0, %v2113_v5 }
 0x421   : > { %2114 = vtanh.f32 %v1138_v6  ;;  %v1602_v6 = vpop.permute.xlu0 %1601 }
 0x426   : > { %v1140_v7 = vpop.f32.mrf.mxu2 }
 0x427   : > { %v2115_v8 = vpop.eup %2114  ;;  %v1141_v9 = vadd.f32 %v2550_v38, %v1140_v7 }
 0x428   : > { %1880 = vmatmul.msk.f32.gmra.mxu3 %vm217_vm0, %v2115_v8 }
 0x429   : > { %2116 = vtanh.f32 %v1141_v9 }
 0x42e   : > { %v1143_v10 = vpop.f32.mrf.mxu2 }
 0x42f   : > { %v2117_v11 = vpop.eup %2116  ;;  %v1144_v12 = vadd.f32 %v2550_v38, %v1143_v10 }
 0x430   : > { %1881 = vmatmul.msk.f32.gmra.mxu3 %vm217_vm0, %v2117_v11 }
 0x431   : > { %2118 = vtanh.f32 %v1144_v12 }
 0x436   : > { %v1146_v13 = vpop.f32.mrf.mxu2 }
 0x437   : > { %v2119_v14 = vpop.eup %2118  ;;  %v1147_v15 = vadd.f32 %v2550_v38, %v1146_v13 }
 0x438   : > { %1882 = vmatmul.msk.f32.gmra.mxu3 %vm217_vm0, %v2119_v14 }
 0x439   : > { %2120 = vtanh.f32 %v1147_v15 }
 0x43e   : > { %v1149_v16 = vpop.f32.mrf.mxu2 }
 0x43f   : > { %v2121_v17 = vpop.eup %2120  ;;  %v1150_v18 = vadd.f32 %v2550_v38, %v1149_v16 }
 0x440   : > { %1883 = vmatmul.msk.f32.gmra.mxu3 %vm217_vm0, %v2121_v17 }
 0x441   : > { %2122 = vtanh.f32 %v1150_v18 }
 0x446   : > { %v1152_v19 = vpop.f32.mrf.mxu2 }
 0x447   : > { %v2123_v20 = vpop.eup %2122  ;;  %v1153_v21 = vadd.f32 %v2550_v38, %v1152_v19  ;;  %v1604_v19 = vpop.permute.xlu1 %1603 }
 0x448   : > { %1884 = vmatmul.msk.f32.gmra.mxu3 %vm217_vm0, %v2123_v20 }
 0x449   : > { %2124 = vtanh.f32 %v1153_v21 }
 0x44f   : > { %v2125_v22 = vpop.eup %2124 }
 0x450   : > { %1885 = vmatmul.msk.f32.gmra.mxu3 %vm217_vm0, %v2125_v22 }
 0x45b   : > { %v1247_v24 = vpop.f32.mrf.mxu3 }
 0x45c   : > { %v1248_v25 = vadd.f32 %v2587_v23, %v1247_v24 }
 0x45e   : > { %v1886_v26 = vmul.f32 -1.442695, %v1248_v25 }
 0x460   : > { %2126 = vpow2.f32 %v1886_v26 }
 0x463   : > { %v1250_v27 = vpop.f32.mrf.mxu3 }
 0x464   : > { %v1251_v28 = vadd.f32 %v2587_v23, %v1250_v27 }
 0x466   : > { %v2127_v29 = vpop.eup %2126  ;;  %v1887_v30 = vmul.f32 -1.442695, %v1251_v28 }
 0x467   : > { %v1343_v31 = vadd.f32 1.0, %v2127_v29 }
 0x468   : > { %2128 = vpow2.f32 %v1887_v30 }
 0x469   : > { %2130 = vrcp.f32 %v1343_v31  ;;  %v1370_v40 = vand.u32 2147483648, %v1343_v31  ;;  %v1368_v43 = vand.u32 2147483647, %v1343_v31  ;;  %vm1364_vm2 = vweird.f32 %v1343_v31 }
 0x46b   : > { %v1253_v32 = vpop.f32.mrf.mxu3  ;;  %v1371_v50 = vor.u32 1.1754944e-38, %v1370_v40  ;;  %vm1369_vm4 = vcmp.eq.f32.partialorder %v1368_v43, 8.507059e+37 }
 0x46c   : > { %v1254_v33 = vadd.f32 %v2587_v23, %v1253_v32 }
 0x46e   : > { %v2129_v34 = vpop.eup %2128  ;;  %v1888_v35 = vmul.f32 -1.442695, %v1254_v33 }
 0x46f   : > { %v2131_v36 = vpop.eup %2130  ;;  %v1344_v37 = vadd.f32 1.0, %v2129_v34 }
 0x470   : > { %v1360_v38 = vmul.f32 %v2131_v36, %v1343_v31  ;;  %2132 = vpow2.f32 %v1888_v35  ;;  %vm1365_vm1 = vweird.f32 %v2131_v36 }
 0x471   : > { %2134 = vrcp.f32 %v1344_v37  ;;  %vm1366_vm3 = vmor %vm1364_vm2, %vm1365_vm1  ;;  %v1385_v57 = vand.u32 2147483648, %v1344_v37  ;;  %v1383_v60 = vand.u32 2147483647, %v1344_v37  ;;  %vm1379_vm6 = vweird.f32 %v1344_v37 }
 0x472   : > { %v1361_v39 = vsub.f32 1.0, %v1360_v38 }
 0x473   : > { %v1256_v41 = vpop.f32.mrf.mxu3  ;;  %v1386_v2 = vor.u32 1.1754944e-38, %v1385_v57  ;;  %vm1384_vm8 = vcmp.eq.f32.partialorder %v1383_v60, 8.507059e+37 }
 0x474   : > { %v1362_v42 = vmul.f32 %v2131_v36, %v1361_v39  ;;  %v1257_v44 = vadd.f32 %v2587_v23, %v1256_v41  ;;  %v1606_v41 = vpop.permute.xlu1 %1605 }
 0x476   : > { %v2133_v45 = vpop.eup %2132  ;;  %v1363_v46 = vadd.f32 %v2131_v36, %v1362_v42  ;;  %v1889_v47 = vmul.f32 -1.442695, %v1257_v44 }
 0x477   : > { %v2135_v48 = vpop.eup %2134  ;;  %v1345_v51 = vadd.f32 1.0, %v2133_v45 }
 0x478   : > { %v1367_v52 = vsel %vm1366_vm3, %v2131_v36, %v1363_v46  ;;  %v1375_v53 = vmul.f32 %v2135_v48, %v1344_v37  ;;  %2136 = vpow2.f32 %v1889_v47  ;;  %vm1380_vm5 = vweird.f32 %v2135_v48 }
 0x479   : > { %v1372_v54 = vsel %vm1369_vm4, %v1371_v50, %v1367_v52  ;;  %2138 = vrcp.f32 %v1345_v51  ;;  %vm1381_vm7 = vmor %vm1379_vm6, %vm1380_vm5  ;;  %v1400_v10 = vand.u32 2147483648, %v1345_v51  ;;  %v1398_v13 = vand.u32 2147483647, %v1345_v51 }
 0x47a   : > { %v1647_v55 = vsel %vm217_vm0, %v1372_v54, %v1600_v49  ;;  %v1376_v56 = vsub.f32 1.0, %v1375_v53  ;;  %vm1394_vm10 = vweird.f32 %v1345_v51  ;;  %v1608_v54 = vpop.permute.xlu2 %1607 }
 0x47b   : > { %1663 = vst [vmem:[%s2598_s19] sm:$0xff] %v1647_v55  ;;  %v1259_v58 = vpop.f32.mrf.mxu3  ;;  %v1401_v20 = vor.u32 1.1754944e-38, %v1400_v10  ;;  %vm1399_vm12 = vcmp.eq.f32.partialorder %v1398_v13, 8.507059e+37 }
 0x47c   : > { %v1377_v59 = vmul.f32 %v2135_v48, %v1376_v56  ;;  %v1260_v61 = vadd.f32 %v2587_v23, %v1259_v58 }
 0x47e   : > { %v2137_v62 = vpop.eup %2136  ;;  %v1378_v63 = vadd.f32 %v2135_v48, %v1377_v59  ;;  %v1890_v0 = vmul.f32 -1.442695, %v1260_v61 }
 0x47f   : > { %v2139_v1 = vpop.eup %2138  ;;  %v1346_v3 = vadd.f32 1.0, %v2137_v62 }
 0x480   : > { %v1382_v4 = vsel %vm1381_vm7, %v2135_v48, %v1378_v63  ;;  %v1390_v5 = vmul.f32 %v2139_v1, %v1345_v51  ;;  %2140 = vpow2.f32 %v1890_v0  ;;  %vm1395_vm9 = vweird.f32 %v2139_v1 }
 0x481   : > { %v1387_v7 = vsel %vm1384_vm8, %v1386_v2, %v1382_v4  ;;  %2142 = vrcp.f32 %v1346_v3  ;;  %vm1396_vm11 = vmor %vm1394_vm10, %vm1395_vm9  ;;  %v1415_v28 = vand.u32 2147483648, %v1346_v3  ;;  %v1413_v31 = vand.u32 2147483647, %v1346_v3 }
 0x482   : > { %v1648_v8 = vsel %vm217_vm0, %v1387_v7, %v1602_v6  ;;  %v1391_v9 = vsub.f32 1.0, %v1390_v5  ;;  %vm1409_vm14 = vweird.f32 %v1346_v3 }
 0x483   : > { %1664 = vst [vmem:[%s2598_s19 + $0x8] sm:$0xff] %v1648_v8  ;;  %v1262_v11 = vpop.f32.mrf.mxu3  ;;  %v1416_v37 = vor.u32 1.1754944e-38, %v1415_v28  ;;  %vm1414_vm1 = vcmp.eq.f32.partialorder %v1413_v31, 8.507059e+37 }
 0x484   : > { %v1392_v12 = vmul.f32 %v2139_v1, %v1391_v9  ;;  %v1263_v14 = vadd.f32 %v2587_v23, %v1262_v11  ;;  %v1610_v11 = vpop.permute.xlu2 %1609 }
 0x486   : > { %v2141_v15 = vpop.eup %2140  ;;  %v1393_v16 = vadd.f32 %v2139_v1, %v1392_v12  ;;  %v1891_v17 = vmul.f32 -1.442695, %v1263_v14 }
 0x487   : > { %v2143_v18 = vpop.eup %2142  ;;  %v1347_v21 = vadd.f32 1.0, %v2141_v15 }
 0x488   : > { %v1397_v22 = vsel %vm1396_vm11, %v2139_v1, %v1393_v16  ;;  %v1405_v24 = vmul.f32 %v2143_v18, %v1346_v3  ;;  %2144 = vpow2.f32 %v1891_v17  ;;  %vm1410_vm13 = vweird.f32 %v2143_v18 }
 0x489   : > { %v1402_v25 = vsel %vm1399_vm12, %v1401_v20, %v1397_v22  ;;  %2146 = vrcp.f32 %v1347_v21  ;;  %vm1411_vm15 = vmor %vm1409_vm14, %vm1410_vm13  ;;  %v1430_v45 = vand.u32 2147483648, %v1347_v21  ;;  %v1428_v48 = vand.u32 2147483647, %v1347_v21 }
 0x48a   : > { %v1649_v26 = vsel %vm217_vm0, %v1402_v25, %v1604_v19  ;;  %v1406_v27 = vsub.f32 1.0, %v1405_v24  ;;  %vm1424_vm3 = vweird.f32 %v1347_v21 }
 0x48b   : > { %1665 = vst [vmem:[%s2598_s19 + $0x10] sm:$0xff] %v1649_v26  ;;  %v1265_v29 = vpop.f32.mrf.mxu3  ;;  %v1431_v55 = vor.u32 1.1754944e-38, %v1430_v45  ;;  %vm1429_vm5 = vcmp.eq.f32.partialorder %v1428_v48, 8.507059e+37 }
 0x48c   : > { %v1407_v30 = vmul.f32 %v2143_v18, %v1406_v27  ;;  %v1266_v32 = vadd.f32 %v2587_v23, %v1265_v29  ;;  %v1612_v29 = vpop.permute.xlu0 %1611 }
 0x48e   : > { %v2145_v33 = vpop.eup %2144  ;;  %v1408_v34 = vadd.f32 %v2143_v18, %v1407_v30  ;;  %v1892_v35 = vmul.f32 -1.442695, %v1266_v32 }
 0x48f   : > { %v2147_v36 = vpop.eup %2146  ;;  %v1348_v38 = vadd.f32 1.0, %v2145_v33 }
 0x490   : > { %v1412_v39 = vsel %vm1411_vm15, %v2143_v18, %v1408_v34  ;;  %v1420_v40 = vmul.f32 %v2147_v36, %v1347_v21  ;;  %2148 = vpow2.f32 %v1892_v35  ;;  %vm1425_vm2 = vweird.f32 %v2147_v36 }
 0x491   : > { %v1417_v42 = vsel %vm1414_vm1, %v1416_v37, %v1412_v39  ;;  %2150 = vrcp.f32 %v1348_v38  ;;  %vm1426_vm4 = vmor %vm1424_vm3, %vm1425_vm2  ;;  %v1445_v62 = vand.u32 2147483648, %v1348_v38  ;;  %v1443_v1 = vand.u32 2147483647, %v1348_v38 }
 0x492   : > { %v1650_v43 = vsel %vm217_vm0, %v1417_v42, %v1606_v41  ;;  %v1421_v44 = vsub.f32 1.0, %v1420_v40  ;;  %vm1439_vm7 = vweird.f32 %v1348_v38 }
 0x493   : > { %1666 = vst [vmem:[%s2598_s19 + $0x18] sm:$0xff] %v1650_v43  ;;  %v1268_v46 = vpop.f32.mrf.mxu3  ;;  %v1446_v7 = vor.u32 1.1754944e-38, %v1445_v62  ;;  %vm1444_vm9 = vcmp.eq.f32.partialorder %v1443_v1, 8.507059e+37 }
 0x494   : > { %v1422_v47 = vmul.f32 %v2147_v36, %v1421_v44  ;;  %v1269_v49 = vadd.f32 %v2587_v23, %v1268_v46  ;;  %v1614_v46 = vpop.permute.xlu1 %1613 }
 0x496   : > { %v2149_v50 = vpop.eup %2148  ;;  %v1423_v51 = vadd.f32 %v2147_v36, %v1422_v47  ;;  %v1893_v52 = vmul.f32 -1.442695, %v1269_v49 }
 0x497   : > { %v2151_v53 = vpop.eup %2150  ;;  %v1349_v56 = vadd.f32 1.0, %v2149_v50 }
 0x498   : > { %v1427_v57 = vsel %vm1426_vm4, %v2147_v36, %v1423_v51  ;;  %v1435_v58 = vmul.f32 %v2151_v53, %v1348_v38  ;;  %2152 = vpow2.f32 %v1893_v52  ;;  %vm1440_vm6 = vweird.f32 %v2151_v53 }
 0x499   : > { %v1432_v59 = vsel %vm1429_vm5, %v1431_v55, %v1427_v57  ;;  %2154 = vrcp.f32 %v1349_v56  ;;  %vm1441_vm8 = vmor %vm1439_vm7, %vm1440_vm6  ;;  %v1460_v15 = vand.u32 2147483648, %v1349_v56  ;;  %v1458_v18 = vand.u32 2147483647, %v1349_v56 }
 0x49a   : > { %v1651_v60 = vsel %vm217_vm0, %v1432_v59, %v1608_v54  ;;  %v1436_v61 = vsub.f32 1.0, %v1435_v58  ;;  %vm1454_vm11 = vweird.f32 %v1349_v56 }
 0x49b   : > { %1667 = vst [vmem:[%s2598_s19 + $0x20] sm:$0xff] %v1651_v60  ;;  %v1271_v63 = vpop.f32.mrf.mxu3  ;;  %v1461_v25 = vor.u32 1.1754944e-38, %v1460_v15  ;;  %vm1459_vm13 = vcmp.eq.f32.partialorder %v1458_v18, 8.507059e+37 }
 0x49c   : > { %v1437_v0 = vmul.f32 %v2151_v53, %v1436_v61  ;;  %v1272_v2 = vadd.f32 %v2587_v23, %v1271_v63  ;;  %v1616_v63 = vpop.permute.xlu2 %1615 }
 0x49e   : > { %v2153_v3 = vpop.eup %2152  ;;  %v1438_v4 = vadd.f32 %v2151_v53, %v1437_v0  ;;  %v1894_v5 = vmul.f32 -1.442695, %v1272_v2 }
 0x49f   : > { %v2155_v6 = vpop.eup %2154  ;;  %v1350_v8 = vadd.f32 1.0, %v2153_v3 }
 0x4a0   : > { %v1442_v9 = vsel %vm1441_vm8, %v2151_v53, %v1438_v4  ;;  %v1450_v10 = vmul.f32 %v2155_v6, %v1349_v56  ;;  %2156 = vpow2.f32 %v1894_v5  ;;  %vm1455_vm10 = vweird.f32 %v2155_v6 }
 0x4a1   : > { %v1447_v12 = vsel %vm1444_vm9, %v1446_v7, %v1442_v9  ;;  %2158 = vrcp.f32 %v1350_v8  ;;  %vm1456_vm12 = vmor %vm1454_vm11, %vm1455_vm10  ;;  %v1475_v33 = vand.u32 2147483648, %v1350_v8  ;;  %v1473_v36 = vand.u32 2147483647, %v1350_v8 }
 0x4a2   : > { %v1652_v13 = vsel %vm217_vm0, %v1447_v12, %v1610_v11  ;;  %v1451_v14 = vsub.f32 1.0, %v1450_v10  ;;  %vm1469_vm15 = vweird.f32 %v1350_v8 }
 0x4a3   : > { %1668 = vst [vmem:[%s2598_s19 + $0x28] sm:$0xff] %v1652_v13  ;;  %v1274_v16 = vpop.f32.mrf.mxu3  ;;  %v1476_v42 = vor.u32 1.1754944e-38, %v1475_v33  ;;  %vm1474_vm2 = vcmp.eq.f32.partialorder %v1473_v36, 8.507059e+37 }
 0x4a4   : > { %v1452_v17 = vmul.f32 %v2155_v6, %v1451_v14  ;;  %v1275_v19 = vadd.f32 %v2587_v23, %v1274_v16  ;;  %v1618_v16 = vpop.permute.xlu0 %1617 }
 0x4a6   : > { %v2157_v20 = vpop.eup %2156  ;;  %v1453_v21 = vadd.f32 %v2155_v6, %v1452_v17  ;;  %v1895_v22 = vmul.f32 -1.442695, %v1275_v19 }
 0x4a7   : > { %v2159_v24 = vpop.eup %2158  ;;  %v1351_v26 = vadd.f32 1.0, %v2157_v20 }
 0x4a8   : > { %v1457_v27 = vsel %vm1456_vm12, %v2155_v6, %v1453_v21  ;;  %v1465_v28 = vmul.f32 %v2159_v24, %v1350_v8  ;;  %2160 = vpow2.f32 %v1895_v22  ;;  %vm1470_vm14 = vweird.f32 %v2159_v24 }
 0x4a9   : > { %v1462_v30 = vsel %vm1459_vm13, %v1461_v25, %v1457_v27  ;;  %2162 = vrcp.f32 %v1351_v26  ;;  %vm1471_vm1 = vmor %vm1469_vm15, %vm1470_vm14  ;;  %v1490_v50 = vand.u32 2147483648, %v1351_v26  ;;  %v1488_v53 = vand.u32 2147483647, %v1351_v26 }
 0x4aa   : > { %v1653_v31 = vsel %vm217_vm0, %v1462_v30, %v1612_v29  ;;  %v1466_v32 = vsub.f32 1.0, %v1465_v28  ;;  %vm1484_vm4 = vweird.f32 %v1351_v26 }
 0x4ab   : > { %1669 = vst [vmem:[%s2598_s19 + $0x30] sm:$0xff] %v1653_v31  ;;  %v1277_v34 = vpop.f32.mrf.mxu3  ;;  %v1491_v59 = vor.u32 1.1754944e-38, %v1490_v50  ;;  %vm1489_vm6 = vcmp.eq.f32.partialorder %v1488_v53, 8.507059e+37 }
 0x4ac   : > { %v1467_v35 = vmul.f32 %v2159_v24, %v1466_v32  ;;  %v1278_v37 = vadd.f32 %v2587_v23, %v1277_v34  ;;  %v1620_v34 = vpop.permute.xlu1 %1619 }
 0x4ae   : > { %v2161_v38 = vpop.eup %2160  ;;  %v1468_v39 = vadd.f32 %v2159_v24, %v1467_v35  ;;  %v1896_v40 = vmul.f32 -1.442695, %v1278_v37 }
 0x4af   : > { %v2163_v41 = vpop.eup %2162  ;;  %v1352_v43 = vadd.f32 1.0, %v2161_v38 }
 0x4b0   : > { %v1472_v44 = vsel %vm1471_vm1, %v2159_v24, %v1468_v39  ;;  %v1480_v45 = vmul.f32 %v2163_v41, %v1351_v26  ;;  %2164 = vpow2.f32 %v1896_v40  ;;  %vm1485_vm3 = vweird.f32 %v2163_v41 }
 0x4b1   : > { %v1477_v47 = vsel %vm1474_vm2, %v1476_v42, %v1472_v44  ;;  %2166 = vrcp.f32 %v1352_v43  ;;  %vm1486_vm5 = vmor %vm1484_vm4, %vm1485_vm3  ;;  %v1505_v3 = vand.u32 2147483648, %v1352_v43  ;;  %v1503_v6 = vand.u32 2147483647, %v1352_v43 }
 0x4b2   : > { %v1654_v48 = vsel %vm217_vm0, %v1477_v47, %v1614_v46  ;;  %v1481_v49 = vsub.f32 1.0, %v1480_v45  ;;  %vm1499_vm8 = vweird.f32 %v1352_v43 }
 0x4b3   : > { %1670 = vst [vmem:[%s2598_s19 + $0x38] sm:$0xff] %v1654_v48  ;;  %v1280_v51 = vpop.f32.mrf.mxu3  ;;  %v1506_v12 = vor.u32 1.1754944e-38, %v1505_v3  ;;  %vm1504_vm10 = vcmp.eq.f32.partialorder %v1503_v6, 8.507059e+37 }
 0x4b4   : > { %v1482_v52 = vmul.f32 %v2163_v41, %v1481_v49  ;;  %v1281_v54 = vadd.f32 %v2587_v23, %v1280_v51  ;;  %v1622_v51 = vpop.permute.xlu2 %1621 }
 0x4b6   : > { %v2165_v55 = vpop.eup %2164  ;;  %v1483_v56 = vadd.f32 %v2163_v41, %v1482_v52  ;;  %v1897_v57 = vmul.f32 -1.442695, %v1281_v54 }
 0x4b7   : > { %v2167_v58 = vpop.eup %2166  ;;  %v1353_v60 = vadd.f32 1.0, %v2165_v55 }
 0x4b8   : > { %v1487_v61 = vsel %vm1486_vm5, %v2163_v41, %v1483_v56  ;;  %v1495_v62 = vmul.f32 %v2167_v58, %v1352_v43  ;;  %2168 = vpow2.f32 %v1897_v57  ;;  %vm1500_vm7 = vweird.f32 %v2167_v58 }
 0x4b9   : > { %v1492_v0 = vsel %vm1489_vm6, %v1491_v59, %v1487_v61  ;;  %2170 = vrcp.f32 %v1353_v60  ;;  %vm1501_vm9 = vmor %vm1499_vm8, %vm1500_vm7  ;;  %v1520_v20 = vand.u32 2147483648, %v1353_v60  ;;  %v1518_v24 = vand.u32 2147483647, %v1353_v60 }
 0x4ba   : > { %v1655_v1 = vsel %vm217_vm0, %v1492_v0, %v1616_v63  ;;  %v1496_v2 = vsub.f32 1.0, %v1495_v62  ;;  %vm1514_vm12 = vweird.f32 %v1353_v60 }
 0x4bb   : > { %1671 = vst [vmem:[%s2598_s19 + $0x40] sm:$0xff] %v1655_v1  ;;  %v1283_v4 = vpop.f32.mrf.mxu3  ;;  %v1521_v30 = vor.u32 1.1754944e-38, %v1520_v20  ;;  %vm1519_vm14 = vcmp.eq.f32.partialorder %v1518_v24, 8.507059e+37 }
 0x4bc   : > { %v1497_v5 = vmul.f32 %v2167_v58, %v1496_v2  ;;  %v1284_v7 = vadd.f32 %v2587_v23, %v1283_v4  ;;  %v1624_v4 = vpop.permute.xlu0 %1623 }
 0x4be   : > { %v2169_v8 = vpop.eup %2168  ;;  %v1498_v9 = vadd.f32 %v2167_v58, %v1497_v5  ;;  %v1898_v10 = vmul.f32 -1.442695, %v1284_v7 }
 0x4bf   : > { %v2171_v11 = vpop.eup %2170  ;;  %v1354_v13 = vadd.f32 1.0, %v2169_v8 }
 0x4c0   : > { %v1502_v14 = vsel %vm1501_vm9, %v2167_v58, %v1498_v9  ;;  %v1510_v15 = vmul.f32 %v2171_v11, %v1353_v60  ;;  %2172 = vpow2.f32 %v1898_v10  ;;  %vm1515_vm11 = vweird.f32 %v2171_v11 }
 0x4c1   : > { %v1507_v17 = vsel %vm1504_vm10, %v1506_v12, %v1502_v14  ;;  %2174 = vrcp.f32 %v1354_v13  ;;  %vm1516_vm13 = vmor %vm1514_vm12, %vm1515_vm11  ;;  %v1535_v38 = vand.u32 2147483648, %v1354_v13  ;;  %v1533_v41 = vand.u32 2147483647, %v1354_v13 }
 0x4c2   : > { %v1656_v18 = vsel %vm217_vm0, %v1507_v17, %v1618_v16  ;;  %v1511_v19 = vsub.f32 1.0, %v1510_v15  ;;  %vm1529_vm1 = vweird.f32 %v1354_v13  ;;  %v1626_v17 = vpop.permute.xlu1 %1625 }
 0x4c3   : > { %1672 = vst [vmem:[%s2598_s19 + $0x48] sm:$0xff] %v1656_v18  ;;  %v1286_v21 = vpop.f32.mrf.mxu3  ;;  %v1536_v47 = vor.u32 1.1754944e-38, %v1535_v38  ;;  %vm1534_vm3 = vcmp.eq.f32.partialorder %v1533_v41, 8.507059e+37 }
 0x4c4   : > { %v1512_v22 = vmul.f32 %v2171_v11, %v1511_v19  ;;  %v1287_v25 = vadd.f32 %v2587_v23, %v1286_v21 }
 0x4c6   : > { %v2173_v26 = vpop.eup %2172  ;;  %v1513_v27 = vadd.f32 %v2171_v11, %v1512_v22  ;;  %v1899_v28 = vmul.f32 -1.442695, %v1287_v25 }
 0x4c7   : > { %v2175_v29 = vpop.eup %2174  ;;  %v1355_v31 = vadd.f32 1.0, %v2173_v26 }
 0x4c8   : > { %v1517_v32 = vsel %vm1516_vm13, %v2171_v11, %v1513_v27  ;;  %v1525_v33 = vmul.f32 %v2175_v29, %v1354_v13  ;;  %2176 = vpow2.f32 %v1899_v28  ;;  %vm1530_vm15 = vweird.f32 %v2175_v29 }
 0x4c9   : > { %v1522_v35 = vsel %vm1519_vm14, %v1521_v30, %v1517_v32  ;;  %2178 = vrcp.f32 %v1355_v31  ;;  %vm1531_vm2 = vmor %vm1529_vm1, %vm1530_vm15  ;;  %v1550_v55 = vand.u32 2147483648, %v1355_v31  ;;  %v1548_v58 = vand.u32 2147483647, %v1355_v31  ;;  %v1628_v30 = vpop.permute.xlu2 %1627 }
 0x4ca   : > { %v1657_v36 = vsel %vm217_vm0, %v1522_v35, %v1620_v34  ;;  %v1526_v37 = vsub.f32 1.0, %v1525_v33  ;;  %vm1544_vm5 = vweird.f32 %v1355_v31 }
 0x4cb   : > { %1673 = vst [vmem:[%s2598_s19 + $0x50] sm:$0xff] %v1657_v36  ;;  %v1289_v39 = vpop.f32.mrf.mxu3  ;;  %v1551_v0 = vor.u32 1.1754944e-38, %v1550_v55  ;;  %vm1549_vm7 = vcmp.eq.f32.partialorder %v1548_v58, 8.507059e+37 }
 0x4cc   : > { %v1527_v40 = vmul.f32 %v2175_v29, %v1526_v37  ;;  %v1290_v42 = vadd.f32 %v2587_v23, %v1289_v39 }
 0x4ce   : > { %v2177_v43 = vpop.eup %2176  ;;  %v1528_v44 = vadd.f32 %v2175_v29, %v1527_v40  ;;  %v1900_v45 = vmul.f32 -1.442695, %v1290_v42  ;;  %v1630_v40 = vpop.permute.xlu0 %1629 }
 0x4cf   : > { %v2179_v46 = vpop.eup %2178  ;;  %v1356_v48 = vadd.f32 1.0, %v2177_v43 }
 0x4d0   : > { %v1532_v49 = vsel %vm1531_vm2, %v2175_v29, %v1528_v44  ;;  %v1540_v50 = vmul.f32 %v2179_v46, %v1355_v31  ;;  %2180 = vpow2.f32 %v1900_v45  ;;  %vm1545_vm4 = vweird.f32 %v2179_v46 }
 0x4d1   : > { %v1537_v52 = vsel %vm1534_vm3, %v1536_v47, %v1532_v49  ;;  %2182 = vrcp.f32 %v1356_v48  ;;  %vm1546_vm6 = vmor %vm1544_vm5, %vm1545_vm4  ;;  %v1563_v9 = vand.u32 2147483647, %v1356_v48  ;;  %vm1559_vm9 = vweird.f32 %v1356_v48 }
 0x4d2   : > { %v1658_v53 = vsel %vm217_vm0, %v1537_v52, %v1622_v51  ;;  %v1541_v54 = vsub.f32 1.0, %v1540_v50 }
 0x4d3   : > { %1674 = vst [vmem:[%s2598_s19 + $0x58] sm:$0xff] %v1658_v53  ;;  %v1292_v56 = vpop.f32.mrf.mxu3  ;;  %vm1564_vm11 = vcmp.eq.f32.partialorder %v1563_v9, 8.507059e+37 }
 0x4d4   : > { %v1542_v57 = vmul.f32 %v2179_v46, %v1541_v54  ;;  %v1293_v59 = vadd.f32 %v2587_v23, %v1292_v56  ;;  %v1565_v23 = vand.u32 2147483648, %v1356_v48 }
 0x4d6   : > { %v2181_v60 = vpop.eup %2180  ;;  %v1543_v61 = vadd.f32 %v2179_v46, %v1542_v57  ;;  %v1901_v62 = vmul.f32 -1.442695, %v1293_v59  ;;  %v1566_v13 = vor.u32 1.1754944e-38, %v1565_v23 }
 0x4d7   : > { %v2183_v63 = vpop.eup %2182  ;;  %v1357_v1 = vadd.f32 1.0, %v2181_v60 }
 0x4d8   : > { %v1547_v2 = vsel %vm1546_vm6, %v2179_v46, %v1543_v61  ;;  %v1555_v3 = vmul.f32 %v2183_v63, %v1356_v48  ;;  %2184 = vpow2.f32 %v1901_v62  ;;  %vm1560_vm8 = vweird.f32 %v2183_v63 }
 0x4d9   : > { %v1552_v5 = vsel %vm1549_vm7, %v1551_v0, %v1547_v2  ;;  %2186 = vrcp.f32 %v1357_v1  ;;  %vm1561_vm10 = vmor %vm1559_vm9, %vm1560_vm8  ;;  %v1580_v21 = vand.u32 2147483648, %v1357_v1  ;;  %v1578_v24 = vand.u32 2147483647, %v1357_v1 }
 0x4da   : > { %v1659_v6 = vsel %vm217_vm0, %v1552_v5, %v1624_v4  ;;  %v1556_v7 = vsub.f32 1.0, %v1555_v3  ;;  %vm1574_vm13 = vweird.f32 %v1357_v1 }
 0x4db   : > { %1675 = vst [vmem:[%s2598_s19 + $0x60] sm:$0xff] %v1659_v6  ;;  %v1581_v27 = vor.u32 1.1754944e-38, %v1580_v21  ;;  %vm1579_vm15 = vcmp.eq.f32.partialorder %v1578_v24, 8.507059e+37 }
 0x4dc   : > { %v1557_v8 = vmul.f32 %v2183_v63, %v1556_v7 }
 0x4de   : > { %v2185_v10 = vpop.eup %2184  ;;  %v1558_v11 = vadd.f32 %v2183_v63, %v1557_v8 }
 0x4df   : > { %v2187_v12 = vpop.eup %2186  ;;  %v1358_v14 = vadd.f32 1.0, %v2185_v10 }
 0x4e0   : > { %v1562_v15 = vsel %vm1561_vm10, %v2183_v63, %v1558_v11  ;;  %v1570_v16 = vmul.f32 %v2187_v12, %v1357_v1  ;;  %vm1575_vm12 = vweird.f32 %v2187_v12 }
 0x4e1   : > { %v1567_v18 = vsel %vm1564_vm11, %v1566_v13, %v1562_v15  ;;  %2188 = vrcp.f32 %v1358_v14  ;;  %vm1576_vm14 = vmor %vm1574_vm13, %vm1575_vm12  ;;  %v1595_v34 = vand.u32 2147483648, %v1358_v14  ;;  %v1593_v36 = vand.u32 2147483647, %v1358_v14 }
 0x4e2   : > { %v1660_v19 = vsel %vm217_vm0, %v1567_v18, %v1626_v17  ;;  %v1571_v20 = vsub.f32 1.0, %v1570_v16  ;;  %vm1589_vm2 = vweird.f32 %v1358_v14 }
 0x4e3   : > { %1676 = vst [vmem:[%s2598_s19 + $0x68] sm:$0xff] %v1660_v19  ;;  %v1596_v38 = vor.u32 1.1754944e-38, %v1595_v34  ;;  %vm1594_vm4 = vcmp.eq.f32.partialorder %v1593_v36, 8.507059e+37 }
 0x4e4   : > { %v1572_v22 = vmul.f32 %v2187_v12, %v1571_v20 }
 0x4e6   : > { %v1573_v25 = vadd.f32 %v2187_v12, %v1572_v22 }
 0x4e7   : > { %v2189_v26 = vpop.eup %2188 }
 0x4e8   : > { %v1577_v28 = vsel %vm1576_vm14, %v2187_v12, %v1573_v25  ;;  %v1585_v29 = vmul.f32 %v2189_v26, %v1358_v14  ;;  %vm1590_vm1 = vweird.f32 %v2189_v26 }
 0x4e9   : > { %v1582_v31 = vsel %vm1579_vm15, %v1581_v27, %v1577_v28  ;;  %vm1591_vm3 = vmor %vm1589_vm2, %vm1590_vm1 }
 0x4ea   : > { %v1661_v32 = vsel %vm217_vm0, %v1582_v31, %v1628_v30  ;;  %v1586_v33 = vsub.f32 1.0, %v1585_v29 }
 0x4eb   : > { %1677 = vst [vmem:[%s2598_s19 + $0x70] sm:$0xff] %v1661_v32 }
 0x4ec   : > { %v1587_v35 = vmul.f32 %v2189_v26, %v1586_v33 }
 0x4ee   : > { %v1588_v37 = vadd.f32 %v2189_v26, %v1587_v35 }
 0x4f0   : > { %v1592_v39 = vsel %vm1591_vm3, %v2189_v26, %v1588_v37 }
 0x4f1   : > { %v1597_v41 = vsel %vm1594_vm4, %v1596_v38, %v1592_v39 }
 0x4f2   : > { %v1662_v42 = vsel %vm217_vm0, %v1597_v41, %v1630_v40 }
 0x4f3   : > { %1678 = vst [vmem:[%s2598_s19 + $0x78] sm:$0xff] %v1662_v42 }
 0x4f4 PF: > { %s14_s12 = sadd.s32 1, %s2230_s12  }
 0x4f5   : > { %p11_p7 = scmp.ge.s32.totalorder %s14_s12, 4  }
 0x4f7   :  { %13 = sbr.rel (!%p11_p7) target bundleno = 1 (0x1), region = 74 }
 0x4fc   :  { %1701 = vsyncpa [#allocation3], 1 }
 0x4fd   :  { %1703 = vsyncpa [#allocation3 + $0x1], 1 }

</bundles_post_ra>
